<compile_context>
chip_gen: v6e
topology: v6e:2x2x1
jax: 0.10.0
libtpu: 0.0.40
codegen_flags: <defaults>
</compile_context>

<pallas_src>
import functools
import math

import numpy as np
import jax
import jax.numpy as jnp
from jax import lax
from jax.experimental import pallas as pl
from jax.experimental.pallas import tpu as pltpu

# Stand-ins for Vocab constants (Vocab is not part of the provided snippet).
NUM_SPECIALS = 4        # len(Vocab.specials), e.g. <pad>, <s>, </s>, <mask>
MASK_INDEX = 3          # Vocab.special2index('<mask>')
IGNORE_INDEX = -100


def _round_up(x, m):
    return (x + m - 1) // m * m


def _random_mask_kernel(x_ref, rnd_ref, len_ref, k_ref, xo_ref, lo_ref, *,
                        num_specials, mask_index, ignore_index, pos_bits):
    # x_ref   : VMEM (TB, Tp) int32 tokens
    # rnd_ref : VMEM (TB, Tp) int32 random bits in [0, 2^31)
    # len_ref : VMEM (TB, 1)  int32 lengths
    # k_ref   : VMEM (TB, 1)  int32 k = ceil(L * p_mask) (exact, precomputed)
    # xo_ref  : VMEM (TB, Tp) int32 tokens with <mask> at chosen positions
    # lo_ref  : VMEM (TB, Tp) int32 labels with -100 at non-chosen positions
    tokens = x_ref[...]
    rnd = rnd_ref[...]
    lengths = len_ref[...]
    k = k_ref[...]
    TB, T = tokens.shape

    pos = lax.broadcasted_iota(jnp.int32, (TB, T), 1)
    eligible = (pos < lengths) & (tokens >= jnp.int32(num_specials))

    # Unique-per-row sort keys: random high bits | position in the low bits.
    high_mask = jnp.int32((0x7FFFFFFF >> pos_bits) << pos_bits)
    keys = (rnd & high_mask) | pos
    # Ineligible positions get the max key so they never fall below threshold.
    maxk = jnp.int32(0x7FFFFFFF)
    ek = jnp.where(eligible, keys, maxk)

    # Per-row binary search (bit-by-bit, MSB -> LSB) for the k-th smallest
    # eligible key:  thr = max{ t : #[eligible & key < t] < k }.
    # 31 iterations of a (TB,T) compare + lane-reduce; no (TB,T,T) temporaries.
    thr = jnp.zeros((TB, 1), jnp.int32)
    for bit in range(30, -1, -1):
        cand = thr | jnp.int32(1 << bit)
        cnt = jnp.sum((ek < cand).astype(jnp.int32), axis=-1, keepdims=True)
        thr = jnp.where(cnt < k, cand, thr)

    # Keys are distinct within a row, so this selects exactly min(k, n_elig).
    mask = eligible & (ek <= thr) & (k > 0)

    # Fallback: if nothing would be selected (no eligible token or k == 0),
    # mask position 0 -- matches the PyTorch reference.
    n_elig = jnp.sum(eligible.astype(jnp.int32), axis=-1, keepdims=True)
    mask = mask | (((k == 0) | (n_elig == 0)) & (pos == 0))

    xo_ref[...] = jnp.where(mask, jnp.int32(mask_index), tokens)
    lo_ref[...] = jnp.where(mask, tokens, jnp.int32(ignore_index))


def random_mask(tokens, lengths, seed, *, p_mask=0.15, tb=128):
    """tokens: [B, T] int32 padded token ids, lengths: [B] int32, seed: int.

    Returns (masked_tokens [B, T], labels [B, T]) with the <mask>/-100
    semantics of RandomMask.forward in training mode.
    """
    tokens = tokens.astype(jnp.int32)
    lengths = lengths.astype(jnp.int32)
    B, T = tokens.shape

    # Lane-dense columns (multiple of 128) and sublane-dense batch tiles.
    Tp = _round_up(max(T, 128), 128)
    tb = _round_up(max(8, min(int(tb), B)), 8)   # don't over-pad tiny batches
    Bp = _round_up(B, tb)
    n_blocks = Bp // tb

    tok_p = jnp.pad(tokens, ((0, Bp - B), (0, Tp - T)))
    len_p = jnp.pad(lengths, (0, Bp - B))

    # Exact k = ceil(L * p_mask) via a float64 host-side table (matches the
    # reference's math.ceil in double precision, no f32 off-by-one).
    k_table = jnp.asarray(
        np.ceil(np.arange(T + 1, dtype=np.float64) * float(p_mask)).astype(np.int32))
    k_p = k_table[len_p]                                     # (Bp,)

    # 31-bit nonnegative random keys, drawn outside the kernel (no pltpu PRNG).
    key = jax.random.PRNGKey(int(seed))
    rnd = jax.random.randint(key, (Bp, Tp), 0, 2**31 - 1, dtype=jnp.int32)

    pos_bits = max(1, (Tp - 1).bit_length())

    kernel = functools.partial(
        _random_mask_kernel,
        num_specials=NUM_SPECIALS,
        mask_index=MASK_INDEX,
        ignore_index=IGNORE_INDEX,
        pos_bits=pos_bits,
    )

    itemsize = 4
    cost = pl.CostEstimate(
        flops=int(96 * Bp * Tp),             # ~31 search steps x ~3 ops/element
        transcendentals=0,
        bytes_accessed=int((4 * Bp * Tp + 4 * Bp) * itemsize),
    )

    x_out, labels_out = pl.pallas_call(
        kernel,
        out_shape=(
            jax.ShapeDtypeStruct((Bp, Tp), jnp.int32),
            jax.ShapeDtypeStruct((Bp, Tp), jnp.int32),
        ),
        grid_spec=pltpu.PrefetchScalarGridSpec(
            num_scalar_prefetch=0,
            grid=(n_blocks,),
            in_specs=[
                pl.BlockSpec((tb, Tp), lambda i: (i, 0)),
                pl.BlockSpec((tb, Tp), lambda i: (i, 0)),
                pl.BlockSpec((tb, 1), lambda i: (i, 0)),
                pl.BlockSpec((tb, 1), lambda i: (i, 0)),
            ],
            out_specs=[
                pl.BlockSpec((tb, Tp), lambda i: (i, 0)),
                pl.BlockSpec((tb, Tp), lambda i: (i, 0)),
            ],
        ),
        compiler_params=pltpu.CompilerParams(
            dimension_semantics=("parallel",),
        ),
        cost_estimate=cost,
    )(tok_p, rnd, len_p.reshape(Bp, 1), k_p.reshape(Bp, 1))

    return x_out[:B, :T], labels_out[:B, :T]


def random_mask_module(feed, *, p_mask=0.15, training=True, seed=0):
    """JAX analogue of RandomMask.forward.

    feed['x'] is (padded_tokens [B, T] int32, lengths [B] int32) -- the dense
    equivalent of the PackedSequence after pad_packed_sequence.
    """
    tokens, lengths = feed['x']
    feed = dict(feed)
    feed['masked'] = (tokens, lengths)
    if training:
        x_masked, labels = random_mask(tokens, lengths, seed, p_mask=p_mask)
        feed['x'] = (x_masked, lengths)
        feed['masked'] = (labels, lengths)
    return feed


if __name__ == "__main__":
    key = jax.random.PRNGKey(0)
    B, T = 2, 16
    p = 0.25

    toks = jax.random.randint(key, (B, T), 0, 32, dtype=jnp.int32)
    toks = toks.at[0, 0].set(1)    # row 0 starts with a special (<s>) token
    toks = toks.at[0, 1].set(10)   # guarantee at least one eligible token
    toks = toks.at[1, :].set(2)    # row 1: all specials -> fallback path
    lengths = jnp.array([16, 5], dtype=jnp.int32)

    feed = {'x': (toks, lengths)}
    out_feed = random_mask_module(feed, p_mask=p, training=True, seed=0)
    x_masked, _ = out_feed['x']
    labels, _ = out_feed['masked']
    x_masked, labels = jax.block_until_ready((x_masked, labels))

    toks_np = np.asarray(toks)
    xm = np.asarray(x_masked)
    lb = np.asarray(labels)
    lens_np = np.asarray(lengths)

    assert xm.shape == (B, T) and lb.shape == (B, T)
    mask = lb != IGNORE_INDEX
    # Output consistency: masked positions carry <mask> / original-token labels.
    assert np.array_equal(xm, np.where(mask, MASK_INDEX, toks_np))
    assert np.array_equal(lb, np.where(mask, toks_np, IGNORE_INDEX))
    # Per-row masking invariants (count + eligibility + fallback).
    for b in range(B):
        L = int(lens_np[b])
        posn = np.arange(T)
        elig = (posn < L) & (toks_np[b] >= NUM_SPECIALS)
        n_elig = int(elig.sum())
        k = math.ceil(L * p)
        mb = mask[b]
        if n_elig == 0 or k == 0:
            assert mb[0] and int(mb.sum()) == 1, "fallback must mask position 0 only"
        else:
            assert int(mb.sum()) == min(k, n_elig), (int(mb.sum()), k, n_elig)
            assert np.all(elig[mb]), "masked a non-eligible / padded position"

    print("KERNEL_OK")
</pallas_src>

<mosaic_0001>
module attributes {stable_mosaic.version = 11 : i64} {
  func.func @_random_mask_kernel(%arg0: i32, %arg1: memref<8x128xi32, #tpu.memory_space<vmem>>, %arg2: memref<8x128xi32, #tpu.memory_space<vmem>>, %arg3: memref<8x1xi32, #tpu.memory_space<vmem>>, %arg4: memref<8x1xi32, #tpu.memory_space<vmem>>, %arg5: memref<8x128xi32, #tpu.memory_space<vmem>>, %arg6: memref<8x128xi32, #tpu.memory_space<vmem>>) attributes {dimension_semantics = [#tpu.dimension_semantics<parallel>], iteration_bounds = array<i64: 1>, scalar_prefetch = 0 : i64, scratch_operands = 0 : i64, tpu.core_type = #tpu.core_type<tc>, window_params = [{transform_indices = @transform_0, window_bounds = array<i64: 8, 128>}, {transform_indices = @transform_1, window_bounds = array<i64: 8, 128>}, {transform_indices = @transform_2, window_bounds = array<i64: 8, 1>}, {transform_indices = @transform_3, window_bounds = array<i64: 8, 1>}, {transform_indices = @transform_4, window_bounds = array<i64: 8, 128>}, {transform_indices = @transform_5, window_bounds = array<i64: 8, 128>}]} {
    %c0 = arith.constant 0 : index
    %c0_0 = arith.constant 0 : index
    %0 = vector.load %arg1[%c0, %c0_0] : memref<8x128xi32, #tpu.memory_space<vmem>>, vector<8x128xi32>
    %c0_1 = arith.constant 0 : index
    %c0_2 = arith.constant 0 : index
    %1 = vector.load %arg2[%c0_1, %c0_2] : memref<8x128xi32, #tpu.memory_space<vmem>>, vector<8x128xi32>
    %c0_3 = arith.constant 0 : index
    %c0_4 = arith.constant 0 : index
    %2 = vector.load %arg3[%c0_3, %c0_4] : memref<8x1xi32, #tpu.memory_space<vmem>>, vector<8x1xi32>
    %c0_5 = arith.constant 0 : index
    %c0_6 = arith.constant 0 : index
    %3 = vector.load %arg4[%c0_5, %c0_6] : memref<8x1xi32, #tpu.memory_space<vmem>>, vector<8x1xi32>
    %4 = tpu.iota {dimensions = array<i32: 1>} : vector<8x128xi32>
    %5 = vector.broadcast %2 : vector<8x1xi32> to vector<8x128xi32>
    %6 = arith.cmpi slt, %4, %5 : vector<8x128xi32>
    %c4_i32 = arith.constant 4 : i32
    %7 = vector.broadcast %c4_i32 : i32 to vector<8x128xi32>
    %8 = arith.cmpi sge, %0, %7 : vector<8x128xi32>
    %9 = arith.andi %6, %8 : vector<8x128xi1>
    %c2147483520_i32 = arith.constant 2147483520 : i32
    %10 = vector.broadcast %c2147483520_i32 : i32 to vector<8x128xi32>
    %11 = arith.andi %1, %10 : vector<8x128xi32>
    %12 = arith.ori %11, %4 : vector<8x128xi32>
    %c2147483647_i32 = arith.constant 2147483647 : i32
    %13 = vector.broadcast %c2147483647_i32 : i32 to vector<8x128xi32>
    %14 = arith.select %9, %12, %13 : vector<8x128xi1>, vector<8x128xi32>
    %c0_i32 = arith.constant 0 : i32
    %15 = vector.broadcast %c0_i32 : i32 to vector<8x1xi32>
    %c1073741824_i32 = arith.constant 1073741824 : i32
    %16 = vector.broadcast %c1073741824_i32 : i32 to vector<8x1xi32>
    %17 = arith.ori %15, %16 : vector<8x1xi32>
    %18 = vector.broadcast %17 : vector<8x1xi32> to vector<8x128xi32>
    %19 = arith.cmpi slt, %14, %18 : vector<8x128xi32>
    %20 = arith.extui %19 : vector<8x128xi1> to vector<8x128xi32>
    %cst = arith.constant dense<0> : vector<8xi32>
    %21 = vector.multi_reduction <add>, %20, %cst [1] : vector<8x128xi32> to vector<8xi32>
    %22 = vector.shape_cast %21 : vector<8xi32> to vector<8x1xi32>
    %23 = arith.cmpi slt, %22, %3 : vector<8x1xi32>
    %24 = arith.select %23, %17, %15 : vector<8x1xi1>, vector<8x1xi32>
    %c536870912_i32 = arith.constant 536870912 : i32
    %25 = vector.broadcast %c536870912_i32 : i32 to vector<8x1xi32>
    %26 = arith.ori %24, %25 : vector<8x1xi32>
    %27 = vector.broadcast %26 : vector<8x1xi32> to vector<8x128xi32>
    %28 = arith.cmpi slt, %14, %27 : vector<8x128xi32>
    %29 = arith.extui %28 : vector<8x128xi1> to vector<8x128xi32>
    %cst_7 = arith.constant dense<0> : vector<8xi32>
    %30 = vector.multi_reduction <add>, %29, %cst_7 [1] : vector<8x128xi32> to vector<8xi32>
    %31 = vector.shape_cast %30 : vector<8xi32> to vector<8x1xi32>
    %32 = arith.cmpi slt, %31, %3 : vector<8x1xi32>
    %33 = arith.select %32, %26, %24 : vector<8x1xi1>, vector<8x1xi32>
    %c268435456_i32 = arith.constant 268435456 : i32
    %34 = vector.broadcast %c268435456_i32 : i32 to vector<8x1xi32>
    %35 = arith.ori %33, %34 : vector<8x1xi32>
    %36 = vector.broadcast %35 : vector<8x1xi32> to vector<8x128xi32>
    %37 = arith.cmpi slt, %14, %36 : vector<8x128xi32>
    %38 = arith.extui %37 : vector<8x128xi1> to vector<8x128xi32>
    %cst_8 = arith.constant dense<0> : vector<8xi32>
    %39 = vector.multi_reduction <add>, %38, %cst_8 [1] : vector<8x128xi32> to vector<8xi32>
    %40 = vector.shape_cast %39 : vector<8xi32> to vector<8x1xi32>
    %41 = arith.cmpi slt, %40, %3 : vector<8x1xi32>
    %42 = arith.select %41, %35, %33 : vector<8x1xi1>, vector<8x1xi32>
    %c134217728_i32 = arith.constant 134217728 : i32
    %43 = vector.broadcast %c134217728_i32 : i32 to vector<8x1xi32>
    %44 = arith.ori %42, %43 : vector<8x1xi32>
    %45 = vector.broadcast %44 : vector<8x1xi32> to vector<8x128xi32>
    %46 = arith.cmpi slt, %14, %45 : vector<8x128xi32>
    %47 = arith.extui %46 : vector<8x128xi1> to vector<8x128xi32>
    %cst_9 = arith.constant dense<0> : vector<8xi32>
    %48 = vector.multi_reduction <add>, %47, %cst_9 [1] : vector<8x128xi32> to vector<8xi32>
    %49 = vector.shape_cast %48 : vector<8xi32> to vector<8x1xi32>
    %50 = arith.cmpi slt, %49, %3 : vector<8x1xi32>
    %51 = arith.select %50, %44, %42 : vector<8x1xi1>, vector<8x1xi32>
    %c67108864_i32 = arith.constant 67108864 : i32
    %52 = vector.broadcast %c67108864_i32 : i32 to vector<8x1xi32>
    %53 = arith.ori %51, %52 : vector<8x1xi32>
    %54 = vector.broadcast %53 : vector<8x1xi32> to vector<8x128xi32>
    %55 = arith.cmpi slt, %14, %54 : vector<8x128xi32>
    %56 = arith.extui %55 : vector<8x128xi1> to vector<8x128xi32>
    %cst_10 = arith.constant dense<0> : vector<8xi32>
    %57 = vector.multi_reduction <add>, %56, %cst_10 [1] : vector<8x128xi32> to vector<8xi32>
    %58 = vector.shape_cast %57 : vector<8xi32> to vector<8x1xi32>
    %59 = arith.cmpi slt, %58, %3 : vector<8x1xi32>
    %60 = arith.select %59, %53, %51 : vector<8x1xi1>, vector<8x1xi32>
    %c33554432_i32 = arith.constant 33554432 : i32
    %61 = vector.broadcast %c33554432_i32 : i32 to vector<8x1xi32>
    %62 = arith.ori %60, %61 : vector<8x1xi32>
    %63 = vector.broadcast %62 : vector<8x1xi32> to vector<8x128xi32>
    %64 = arith.cmpi slt, %14, %63 : vector<8x128xi32>
    %65 = arith.extui %64 : vector<8x128xi1> to vector<8x128xi32>
    %cst_11 = arith.constant dense<0> : vector<8xi32>
    %66 = vector.multi_reduction <add>, %65, %cst_11 [1] : vector<8x128xi32> to vector<8xi32>
    %67 = vector.shape_cast %66 : vector<8xi32> to vector<8x1xi32>
    %68 = arith.cmpi slt, %67, %3 : vector<8x1xi32>
    %69 = arith.select %68, %62, %60 : vector<8x1xi1>, vector<8x1xi32>
    %c16777216_i32 = arith.constant 16777216 : i32
    %70 = vector.broadcast %c16777216_i32 : i32 to vector<8x1xi32>
    %71 = arith.ori %69, %70 : vector<8x1xi32>
    %72 = vector.broadcast %71 : vector<8x1xi32> to vector<8x128xi32>
    %73 = arith.cmpi slt, %14, %72 : vector<8x128xi32>
    %74 = arith.extui %73 : vector<8x128xi1> to vector<8x128xi32>
    %cst_12 = arith.constant dense<0> : vector<8xi32>
    %75 = vector.multi_reduction <add>, %74, %cst_12 [1] : vector<8x128xi32> to vector<8xi32>
    %76 = vector.shape_cast %75 : vector<8xi32> to vector<8x1xi32>
    %77 = arith.cmpi slt, %76, %3 : vector<8x1xi32>
    %78 = arith.select %77, %71, %69 : vector<8x1xi1>, vector<8x1xi32>
    %c8388608_i32 = arith.constant 8388608 : i32
    %79 = vector.broadcast %c8388608_i32 : i32 to vector<8x1xi32>
    %80 = arith.ori %78, %79 : vector<8x1xi32>
    %81 = vector.broadcast %80 : vector<8x1xi32> to vector<8x128xi32>
    %82 = arith.cmpi slt, %14, %81 : vector<8x128xi32>
    %83 = arith.extui %82 : vector<8x128xi1> to vector<8x128xi32>
    %cst_13 = arith.constant dense<0> : vector<8xi32>
    %84 = vector.multi_reduction <add>, %83, %cst_13 [1] : vector<8x128xi32> to vector<8xi32>
    %85 = vector.shape_cast %84 : vector<8xi32> to vector<8x1xi32>
    %86 = arith.cmpi slt, %85, %3 : vector<8x1xi32>
    %87 = arith.select %86, %80, %78 : vector<8x1xi1>, vector<8x1xi32>
    %c4194304_i32 = arith.constant 4194304 : i32
    %88 = vector.broadcast %c4194304_i32 : i32 to vector<8x1xi32>
    %89 = arith.ori %87, %88 : vector<8x1xi32>
    %90 = vector.broadcast %89 : vector<8x1xi32> to vector<8x128xi32>
    %91 = arith.cmpi slt, %14, %90 : vector<8x128xi32>
    %92 = arith.extui %91 : vector<8x128xi1> to vector<8x128xi32>
    %cst_14 = arith.constant dense<0> : vector<8xi32>
    %93 = vector.multi_reduction <add>, %92, %cst_14 [1] : vector<8x128xi32> to vector<8xi32>
    %94 = vector.shape_cast %93 : vector<8xi32> to vector<8x1xi32>
    %95 = arith.cmpi slt, %94, %3 : vector<8x1xi32>
    %96 = arith.select %95, %89, %87 : vector<8x1xi1>, vector<8x1xi32>
    %c2097152_i32 = arith.constant 2097152 : i32
    %97 = vector.broadcast %c2097152_i32 : i32 to vector<8x1xi32>
    %98 = arith.ori %96, %97 : vector<8x1xi32>
    %99 = vector.broadcast %98 : vector<8x1xi32> to vector<8x128xi32>
    %100 = arith.cmpi slt, %14, %99 : vector<8x128xi32>
    %101 = arith.extui %100 : vector<8x128xi1> to vector<8x128xi32>
    %cst_15 = arith.constant dense<0> : vector<8xi32>
    %102 = vector.multi_reduction <add>, %101, %cst_15 [1] : vector<8x128xi32> to vector<8xi32>
    %103 = vector.shape_cast %102 : vector<8xi32> to vector<8x1xi32>
    %104 = arith.cmpi slt, %103, %3 : vector<8x1xi32>
    %105 = arith.select %104, %98, %96 : vector<8x1xi1>, vector<8x1xi32>
    %c1048576_i32 = arith.constant 1048576 : i32
    %106 = vector.broadcast %c1048576_i32 : i32 to vector<8x1xi32>
    %107 = arith.ori %105, %106 : vector<8x1xi32>
    %108 = vector.broadcast %107 : vector<8x1xi32> to vector<8x128xi32>
    %109 = arith.cmpi slt, %14, %108 : vector<8x128xi32>
    %110 = arith.extui %109 : vector<8x128xi1> to vector<8x128xi32>
    %cst_16 = arith.constant dense<0> : vector<8xi32>
    %111 = vector.multi_reduction <add>, %110, %cst_16 [1] : vector<8x128xi32> to vector<8xi32>
    %112 = vector.shape_cast %111 : vector<8xi32> to vector<8x1xi32>
    %113 = arith.cmpi slt, %112, %3 : vector<8x1xi32>
    %114 = arith.select %113, %107, %105 : vector<8x1xi1>, vector<8x1xi32>
    %c524288_i32 = arith.constant 524288 : i32
    %115 = vector.broadcast %c524288_i32 : i32 to vector<8x1xi32>
    %116 = arith.ori %114, %115 : vector<8x1xi32>
    %117 = vector.broadcast %116 : vector<8x1xi32> to vector<8x128xi32>
    %118 = arith.cmpi slt, %14, %117 : vector<8x128xi32>
    %119 = arith.extui %118 : vector<8x128xi1> to vector<8x128xi32>
    %cst_17 = arith.constant dense<0> : vector<8xi32>
    %120 = vector.multi_reduction <add>, %119, %cst_17 [1] : vector<8x128xi32> to vector<8xi32>
    %121 = vector.shape_cast %120 : vector<8xi32> to vector<8x1xi32>
    %122 = arith.cmpi slt, %121, %3 : vector<8x1xi32>
    %123 = arith.select %122, %116, %114 : vector<8x1xi1>, vector<8x1xi32>
    %c262144_i32 = arith.constant 262144 : i32
    %124 = vector.broadcast %c262144_i32 : i32 to vector<8x1xi32>
    %125 = arith.ori %123, %124 : vector<8x1xi32>
    %126 = vector.broadcast %125 : vector<8x1xi32> to vector<8x128xi32>
    %127 = arith.cmpi slt, %14, %126 : vector<8x128xi32>
    %128 = arith.extui %127 : vector<8x128xi1> to vector<8x128xi32>
    %cst_18 = arith.constant dense<0> : vector<8xi32>
    %129 = vector.multi_reduction <add>, %128, %cst_18 [1] : vector<8x128xi32> to vector<8xi32>
    %130 = vector.shape_cast %129 : vector<8xi32> to vector<8x1xi32>
    %131 = arith.cmpi slt, %130, %3 : vector<8x1xi32>
    %132 = arith.select %131, %125, %123 : vector<8x1xi1>, vector<8x1xi32>
    %c131072_i32 = arith.constant 131072 : i32
    %133 = vector.broadcast %c131072_i32 : i32 to vector<8x1xi32>
    %134 = arith.ori %132, %133 : vector<8x1xi32>
    %135 = vector.broadcast %134 : vector<8x1xi32> to vector<8x128xi32>
    %136 = arith.cmpi slt, %14, %135 : vector<8x128xi32>
    %137 = arith.extui %136 : vector<8x128xi1> to vector<8x128xi32>
    %cst_19 = arith.constant dense<0> : vector<8xi32>
    %138 = vector.multi_reduction <add>, %137, %cst_19 [1] : vector<8x128xi32> to vector<8xi32>
    %139 = vector.shape_cast %138 : vector<8xi32> to vector<8x1xi32>
    %140 = arith.cmpi slt, %139, %3 : vector<8x1xi32>
    %141 = arith.select %140, %134, %132 : vector<8x1xi1>, vector<8x1xi32>
    %c65536_i32 = arith.constant 65536 : i32
    %142 = vector.broadcast %c65536_i32 : i32 to vector<8x1xi32>
    %143 = arith.ori %141, %142 : vector<8x1xi32>
    %144 = vector.broadcast %143 : vector<8x1xi32> to vector<8x128xi32>
    %145 = arith.cmpi slt, %14, %144 : vector<8x128xi32>
    %146 = arith.extui %145 : vector<8x128xi1> to vector<8x128xi32>
    %cst_20 = arith.constant dense<0> : vector<8xi32>
    %147 = vector.multi_reduction <add>, %146, %cst_20 [1] : vector<8x128xi32> to vector<8xi32>
    %148 = vector.shape_cast %147 : vector<8xi32> to vector<8x1xi32>
    %149 = arith.cmpi slt, %148, %3 : vector<8x1xi32>
    %150 = arith.select %149, %143, %141 : vector<8x1xi1>, vector<8x1xi32>
    %c32768_i32 = arith.constant 32768 : i32
    %151 = vector.broadcast %c32768_i32 : i32 to vector<8x1xi32>
    %152 = arith.ori %150, %151 : vector<8x1xi32>
    %153 = vector.broadcast %152 : vector<8x1xi32> to vector<8x128xi32>
    %154 = arith.cmpi slt, %14, %153 : vector<8x128xi32>
    %155 = arith.extui %154 : vector<8x128xi1> to vector<8x128xi32>
    %cst_21 = arith.constant dense<0> : vector<8xi32>
    %156 = vector.multi_reduction <add>, %155, %cst_21 [1] : vector<8x128xi32> to vector<8xi32>
    %157 = vector.shape_cast %156 : vector<8xi32> to vector<8x1xi32>
    %158 = arith.cmpi slt, %157, %3 : vector<8x1xi32>
    %159 = arith.select %158, %152, %150 : vector<8x1xi1>, vector<8x1xi32>
    %c16384_i32 = arith.constant 16384 : i32
    %160 = vector.broadcast %c16384_i32 : i32 to vector<8x1xi32>
    %161 = arith.ori %159, %160 : vector<8x1xi32>
    %162 = vector.broadcast %161 : vector<8x1xi32> to vector<8x128xi32>
    %163 = arith.cmpi slt, %14, %162 : vector<8x128xi32>
    %164 = arith.extui %163 : vector<8x128xi1> to vector<8x128xi32>
    %cst_22 = arith.constant dense<0> : vector<8xi32>
    %165 = vector.multi_reduction <add>, %164, %cst_22 [1] : vector<8x128xi32> to vector<8xi32>
    %166 = vector.shape_cast %165 : vector<8xi32> to vector<8x1xi32>
    %167 = arith.cmpi slt, %166, %3 : vector<8x1xi32>
    %168 = arith.select %167, %161, %159 : vector<8x1xi1>, vector<8x1xi32>
    %c8192_i32 = arith.constant 8192 : i32
    %169 = vector.broadcast %c8192_i32 : i32 to vector<8x1xi32>
    %170 = arith.ori %168, %169 : vector<8x1xi32>
    %171 = vector.broadcast %170 : vector<8x1xi32> to vector<8x128xi32>
    %172 = arith.cmpi slt, %14, %171 : vector<8x128xi32>
    %173 = arith.extui %172 : vector<8x128xi1> to vector<8x128xi32>
    %cst_23 = arith.constant dense<0> : vector<8xi32>
    %174 = vector.multi_reduction <add>, %173, %cst_23 [1] : vector<8x128xi32> to vector<8xi32>
    %175 = vector.shape_cast %174 : vector<8xi32> to vector<8x1xi32>
    %176 = arith.cmpi slt, %175, %3 : vector<8x1xi32>
    %177 = arith.select %176, %170, %168 : vector<8x1xi1>, vector<8x1xi32>
    %c4096_i32 = arith.constant 4096 : i32
    %178 = vector.broadcast %c4096_i32 : i32 to vector<8x1xi32>
    %179 = arith.ori %177, %178 : vector<8x1xi32>
    %180 = vector.broadcast %179 : vector<8x1xi32> to vector<8x128xi32>
    %181 = arith.cmpi slt, %14, %180 : vector<8x128xi32>
    %182 = arith.extui %181 : vector<8x128xi1> to vector<8x128xi32>
    %cst_24 = arith.constant dense<0> : vector<8xi32>
    %183 = vector.multi_reduction <add>, %182, %cst_24 [1] : vector<8x128xi32> to vector<8xi32>
    %184 = vector.shape_cast %183 : vector<8xi32> to vector<8x1xi32>
    %185 = arith.cmpi slt, %184, %3 : vector<8x1xi32>
    %186 = arith.select %185, %179, %177 : vector<8x1xi1>, vector<8x1xi32>
    %c2048_i32 = arith.constant 2048 : i32
    %187 = vector.broadcast %c2048_i32 : i32 to vector<8x1xi32>
    %188 = arith.ori %186, %187 : vector<8x1xi32>
    %189 = vector.broadcast %188 : vector<8x1xi32> to vector<8x128xi32>
    %190 = arith.cmpi slt, %14, %189 : vector<8x128xi32>
    %191 = arith.extui %190 : vector<8x128xi1> to vector<8x128xi32>
    %cst_25 = arith.constant dense<0> : vector<8xi32>
    %192 = vector.multi_reduction <add>, %191, %cst_25 [1] : vector<8x128xi32> to vector<8xi32>
    %193 = vector.shape_cast %192 : vector<8xi32> to vector<8x1xi32>
    %194 = arith.cmpi slt, %193, %3 : vector<8x1xi32>
    %195 = arith.select %194, %188, %186 : vector<8x1xi1>, vector<8x1xi32>
    %c1024_i32 = arith.constant 1024 : i32
    %196 = vector.broadcast %c1024_i32 : i32 to vector<8x1xi32>
    %197 = arith.ori %195, %196 : vector<8x1xi32>
    %198 = vector.broadcast %197 : vector<8x1xi32> to vector<8x128xi32>
    %199 = arith.cmpi slt, %14, %198 : vector<8x128xi32>
    %200 = arith.extui %199 : vector<8x128xi1> to vector<8x128xi32>
    %cst_26 = arith.constant dense<0> : vector<8xi32>
    %201 = vector.multi_reduction <add>, %200, %cst_26 [1] : vector<8x128xi32> to vector<8xi32>
    %202 = vector.shape_cast %201 : vector<8xi32> to vector<8x1xi32>
    %203 = arith.cmpi slt, %202, %3 : vector<8x1xi32>
    %204 = arith.select %203, %197, %195 : vector<8x1xi1>, vector<8x1xi32>
    %c512_i32 = arith.constant 512 : i32
    %205 = vector.broadcast %c512_i32 : i32 to vector<8x1xi32>
    %206 = arith.ori %204, %205 : vector<8x1xi32>
    %207 = vector.broadcast %206 : vector<8x1xi32> to vector<8x128xi32>
    %208 = arith.cmpi slt, %14, %207 : vector<8x128xi32>
    %209 = arith.extui %208 : vector<8x128xi1> to vector<8x128xi32>
    %cst_27 = arith.constant dense<0> : vector<8xi32>
    %210 = vector.multi_reduction <add>, %209, %cst_27 [1] : vector<8x128xi32> to vector<8xi32>
    %211 = vector.shape_cast %210 : vector<8xi32> to vector<8x1xi32>
    %212 = arith.cmpi slt, %211, %3 : vector<8x1xi32>
    %213 = arith.select %212, %206, %204 : vector<8x1xi1>, vector<8x1xi32>
    %c256_i32 = arith.constant 256 : i32
    %214 = vector.broadcast %c256_i32 : i32 to vector<8x1xi32>
    %215 = arith.ori %213, %214 : vector<8x1xi32>
    %216 = vector.broadcast %215 : vector<8x1xi32> to vector<8x128xi32>
    %217 = arith.cmpi slt, %14, %216 : vector<8x128xi32>
    %218 = arith.extui %217 : vector<8x128xi1> to vector<8x128xi32>
    %cst_28 = arith.constant dense<0> : vector<8xi32>
    %219 = vector.multi_reduction <add>, %218, %cst_28 [1] : vector<8x128xi32> to vector<8xi32>
    %220 = vector.shape_cast %219 : vector<8xi32> to vector<8x1xi32>
    %221 = arith.cmpi slt, %220, %3 : vector<8x1xi32>
    %222 = arith.select %221, %215, %213 : vector<8x1xi1>, vector<8x1xi32>
    %c128_i32 = arith.constant 128 : i32
    %223 = vector.broadcast %c128_i32 : i32 to vector<8x1xi32>
    %224 = arith.ori %222, %223 : vector<8x1xi32>
    %225 = vector.broadcast %224 : vector<8x1xi32> to vector<8x128xi32>
    %226 = arith.cmpi slt, %14, %225 : vector<8x128xi32>
    %227 = arith.extui %226 : vector<8x128xi1> to vector<8x128xi32>
    %cst_29 = arith.constant dense<0> : vector<8xi32>
    %228 = vector.multi_reduction <add>, %227, %cst_29 [1] : vector<8x128xi32> to vector<8xi32>
    %229 = vector.shape_cast %228 : vector<8xi32> to vector<8x1xi32>
    %230 = arith.cmpi slt, %229, %3 : vector<8x1xi32>
    %231 = arith.select %230, %224, %222 : vector<8x1xi1>, vector<8x1xi32>
    %c64_i32 = arith.constant 64 : i32
    %232 = vector.broadcast %c64_i32 : i32 to vector<8x1xi32>
    %233 = arith.ori %231, %232 : vector<8x1xi32>
    %234 = vector.broadcast %233 : vector<8x1xi32> to vector<8x128xi32>
    %235 = arith.cmpi slt, %14, %234 : vector<8x128xi32>
    %236 = arith.extui %235 : vector<8x128xi1> to vector<8x128xi32>
    %cst_30 = arith.constant dense<0> : vector<8xi32>
    %237 = vector.multi_reduction <add>, %236, %cst_30 [1] : vector<8x128xi32> to vector<8xi32>
    %238 = vector.shape_cast %237 : vector<8xi32> to vector<8x1xi32>
    %239 = arith.cmpi slt, %238, %3 : vector<8x1xi32>
    %240 = arith.select %239, %233, %231 : vector<8x1xi1>, vector<8x1xi32>
    %c32_i32 = arith.constant 32 : i32
    %241 = vector.broadcast %c32_i32 : i32 to vector<8x1xi32>
    %242 = arith.ori %240, %241 : vector<8x1xi32>
    %243 = vector.broadcast %242 : vector<8x1xi32> to vector<8x128xi32>
    %244 = arith.cmpi slt, %14, %243 : vector<8x128xi32>
    %245 = arith.extui %244 : vector<8x128xi1> to vector<8x128xi32>
    %cst_31 = arith.constant dense<0> : vector<8xi32>
    %246 = vector.multi_reduction <add>, %245, %cst_31 [1] : vector<8x128xi32> to vector<8xi32>
    %247 = vector.shape_cast %246 : vector<8xi32> to vector<8x1xi32>
    %248 = arith.cmpi slt, %247, %3 : vector<8x1xi32>
    %249 = arith.select %248, %242, %240 : vector<8x1xi1>, vector<8x1xi32>
    %c16_i32 = arith.constant 16 : i32
    %250 = vector.broadcast %c16_i32 : i32 to vector<8x1xi32>
    %251 = arith.ori %249, %250 : vector<8x1xi32>
    %252 = vector.broadcast %251 : vector<8x1xi32> to vector<8x128xi32>
    %253 = arith.cmpi slt, %14, %252 : vector<8x128xi32>
    %254 = arith.extui %253 : vector<8x128xi1> to vector<8x128xi32>
    %cst_32 = arith.constant dense<0> : vector<8xi32>
    %255 = vector.multi_reduction <add>, %254, %cst_32 [1] : vector<8x128xi32> to vector<8xi32>
    %256 = vector.shape_cast %255 : vector<8xi32> to vector<8x1xi32>
    %257 = arith.cmpi slt, %256, %3 : vector<8x1xi32>
    %258 = arith.select %257, %251, %249 : vector<8x1xi1>, vector<8x1xi32>
    %c8_i32 = arith.constant 8 : i32
    %259 = vector.broadcast %c8_i32 : i32 to vector<8x1xi32>
    %260 = arith.ori %258, %259 : vector<8x1xi32>
    %261 = vector.broadcast %260 : vector<8x1xi32> to vector<8x128xi32>
    %262 = arith.cmpi slt, %14, %261 : vector<8x128xi32>
    %263 = arith.extui %262 : vector<8x128xi1> to vector<8x128xi32>
    %cst_33 = arith.constant dense<0> : vector<8xi32>
    %264 = vector.multi_reduction <add>, %263, %cst_33 [1] : vector<8x128xi32> to vector<8xi32>
    %265 = vector.shape_cast %264 : vector<8xi32> to vector<8x1xi32>
    %266 = arith.cmpi slt, %265, %3 : vector<8x1xi32>
    %267 = arith.select %266, %260, %258 : vector<8x1xi1>, vector<8x1xi32>
    %c4_i32_34 = arith.constant 4 : i32
    %268 = vector.broadcast %c4_i32_34 : i32 to vector<8x1xi32>
    %269 = arith.ori %267, %268 : vector<8x1xi32>
    %270 = vector.broadcast %269 : vector<8x1xi32> to vector<8x128xi32>
    %271 = arith.cmpi slt, %14, %270 : vector<8x128xi32>
    %272 = arith.extui %271 : vector<8x128xi1> to vector<8x128xi32>
    %cst_35 = arith.constant dense<0> : vector<8xi32>
    %273 = vector.multi_reduction <add>, %272, %cst_35 [1] : vector<8x128xi32> to vector<8xi32>
    %274 = vector.shape_cast %273 : vector<8xi32> to vector<8x1xi32>
    %275 = arith.cmpi slt, %274, %3 : vector<8x1xi32>
    %276 = arith.select %275, %269, %267 : vector<8x1xi1>, vector<8x1xi32>
    %c2_i32 = arith.constant 2 : i32
    %277 = vector.broadcast %c2_i32 : i32 to vector<8x1xi32>
    %278 = arith.ori %276, %277 : vector<8x1xi32>
    %279 = vector.broadcast %278 : vector<8x1xi32> to vector<8x128xi32>
    %280 = arith.cmpi slt, %14, %279 : vector<8x128xi32>
    %281 = arith.extui %280 : vector<8x128xi1> to vector<8x128xi32>
    %cst_36 = arith.constant dense<0> : vector<8xi32>
    %282 = vector.multi_reduction <add>, %281, %cst_36 [1] : vector<8x128xi32> to vector<8xi32>
    %283 = vector.shape_cast %282 : vector<8xi32> to vector<8x1xi32>
    %284 = arith.cmpi slt, %283, %3 : vector<8x1xi32>
    %285 = arith.select %284, %278, %276 : vector<8x1xi1>, vector<8x1xi32>
    %c1_i32 = arith.constant 1 : i32
    %286 = vector.broadcast %c1_i32 : i32 to vector<8x1xi32>
    %287 = arith.ori %285, %286 : vector<8x1xi32>
    %288 = vector.broadcast %287 : vector<8x1xi32> to vector<8x128xi32>
    %289 = arith.cmpi slt, %14, %288 : vector<8x128xi32>
    %290 = arith.extui %289 : vector<8x128xi1> to vector<8x128xi32>
    %cst_37 = arith.constant dense<0> : vector<8xi32>
    %291 = vector.multi_reduction <add>, %290, %cst_37 [1] : vector<8x128xi32> to vector<8xi32>
    %292 = vector.shape_cast %291 : vector<8xi32> to vector<8x1xi32>
    %293 = arith.cmpi slt, %292, %3 : vector<8x1xi32>
    %294 = arith.select %293, %287, %285 : vector<8x1xi1>, vector<8x1xi32>
    %295 = vector.broadcast %294 : vector<8x1xi32> to vector<8x128xi32>
    %296 = arith.cmpi sle, %14, %295 : vector<8x128xi32>
    %297 = arith.andi %9, %296 : vector<8x128xi1>
    %c0_i32_38 = arith.constant 0 : i32
    %298 = vector.broadcast %c0_i32_38 : i32 to vector<8x1xi32>
    %299 = arith.cmpi sgt, %3, %298 : vector<8x1xi32>
    %300 = vector.broadcast %299 : vector<8x1xi1> to vector<8x128xi1>
    %301 = arith.andi %297, %300 : vector<8x128xi1>
    %302 = arith.extui %9 : vector<8x128xi1> to vector<8x128xi32>
    %cst_39 = arith.constant dense<0> : vector<8xi32>
    %303 = vector.multi_reduction <add>, %302, %cst_39 [1] : vector<8x128xi32> to vector<8xi32>
    %304 = vector.shape_cast %303 : vector<8xi32> to vector<8x1xi32>
    %c0_i32_40 = arith.constant 0 : i32
    %305 = vector.broadcast %c0_i32_40 : i32 to vector<8x1xi32>
    %306 = arith.cmpi eq, %3, %305 : vector<8x1xi32>
    %c0_i32_41 = arith.constant 0 : i32
    %307 = vector.broadcast %c0_i32_41 : i32 to vector<8x1xi32>
    %308 = arith.cmpi eq, %304, %307 : vector<8x1xi32>
    %309 = arith.ori %306, %308 : vector<8x1xi1>
    %c0_i32_42 = arith.constant 0 : i32
    %310 = vector.broadcast %c0_i32_42 : i32 to vector<8x128xi32>
    %311 = arith.cmpi eq, %4, %310 : vector<8x128xi32>
    %312 = vector.broadcast %309 : vector<8x1xi1> to vector<8x128xi1>
    %313 = arith.andi %312, %311 : vector<8x128xi1>
    %314 = arith.ori %301, %313 : vector<8x128xi1>
    %c3_i32 = arith.constant 3 : i32
    %315 = vector.broadcast %c3_i32 : i32 to vector<8x128xi32>
    %316 = arith.select %314, %315, %0 : vector<8x128xi1>, vector<8x128xi32>
    %c0_43 = arith.constant 0 : index
    %c0_44 = arith.constant 0 : index
    %317 = vector.load %arg5[%c0_43, %c0_44] : memref<8x128xi32, #tpu.memory_space<vmem>>, vector<8x128xi32>
    tpu.vector_store %arg5[%c0_43, %c0_44], %316 {strides = array<i32>} : memref<8x128xi32, #tpu.memory_space<vmem>>, vector<8x128xi32>,
    %c-100_i32 = arith.constant -100 : i32
    %318 = vector.broadcast %c-100_i32 : i32 to vector<8x128xi32>
    %319 = arith.select %314, %0, %318 : vector<8x128xi1>, vector<8x128xi32>
    %c0_45 = arith.constant 0 : index
    %c0_46 = arith.constant 0 : index
    %320 = vector.load %arg6[%c0_45, %c0_46] : memref<8x128xi32, #tpu.memory_space<vmem>>, vector<8x128xi32>
    tpu.vector_store %arg6[%c0_45, %c0_46], %319 {strides = array<i32>} : memref<8x128xi32, #tpu.memory_space<vmem>>, vector<8x128xi32>,
    return
  }
  func.func @transform_0(%arg0: i32) -> (i32, i32) {
    %c0_i32 = arith.constant 0 : i32
    %c0_i32_0 = arith.constant 0 : i32
    return %arg0, %c0_i32 : i32, i32
  }
  func.func @transform_1(%arg0: i32) -> (i32, i32) {
    %c0_i32 = arith.constant 0 : i32
    %c0_i32_0 = arith.constant 0 : i32
    return %arg0, %c0_i32 : i32, i32
  }
  func.func @transform_2(%arg0: i32) -> (i32, i32) {
    %c0_i32 = arith.constant 0 : i32
    %c0_i32_0 = arith.constant 0 : i32
    return %arg0, %c0_i32 : i32, i32
  }
  func.func @transform_3(%arg0: i32) -> (i32, i32) {
    %c0_i32 = arith.constant 0 : i32
    %c0_i32_0 = arith.constant 0 : i32
    return %arg0, %c0_i32 : i32, i32
  }
  func.func @transform_4(%arg0: i32) -> (i32, i32) {
    %c0_i32 = arith.constant 0 : i32
    %c0_i32_0 = arith.constant 0 : i32
    return %arg0, %c0_i32 : i32, i32
  }
  func.func @transform_5(%arg0: i32) -> (i32, i32) {
    %c0_i32 = arith.constant 0 : i32
    %c0_i32_0 = arith.constant 0 : i32
    return %arg0, %c0_i32 : i32, i32
  }
}

</mosaic_0001>

<bundles_post_ra>
// kernel: tpu_custom_call.1
= control target key start
LH: loop header
LB: loop body
LE: loop exit
PB: predicated region body
PF: predicated region fallthrough
CT: control target
= control target key end

     0   :  { %11 = vsyncpa [#allocation3], 0  ;;  %v771_v1 = vmov 0   ;;  %s951_s0 = inlined_call_operand.vmem [shape: s32[8,128], index: 0, kind: input, shape index: {}]   ;;  %s952_s1 = inlined_call_operand.vmem [shape: s32[8,128], index: 1, kind: input, shape index: {}]   ;;  %s953_s2 = inlined_call_operand.vmem [shape: s32[8,1], index: 2, kind: input, shape index: {}]   ;;  %s954_s3 = inlined_call_operand.vmem [shape: s32[8,1], index: 3, kind: input, shape index: {}]   ;;  %s955_s4 = inlined_call_operand.hbm [shape: s32[8,128], index: 4, kind: output, shape index: {0}]   ;;  %s956_s5 = inlined_call_operand.hbm [shape: s32[8,128], index: 5, kind: output, shape index: {1}]  }
   0x1   :  { %v23_v0 = vld [vmem:[%s953_s2] sm:$0xff]  ;;  %723 = vset.pattern.permute.xlu0 %v771_v1  ;;  %724 = vset.pattern.permute.xlu1 %v771_v1 }
   0x2   :  { %12 = vsyncpa [#allocation5], 0  ;;  %28 = vperm.xlu0 %723, %v23_v0   ;;  %v25_v2 = vlaneseq  ;;  %v22_v3 = vld [vmem:[%s952_s1] sm:$0xff]  ;;  %s773_s27 = smov [#allocation4]  }
   0x3   :  { %v33_v5 = vand.u32 2147483520, %v22_v3  ;;  %v21_v6 = vld [vmem:[%s951_s0] sm:$0xff]  ;;  %s708_s28 = sshll.u32 %s773_s27, 4  ;;  %s709_s28 = int_to_ptr.vmem [resolvable:$true] %s708_s28 }
   0x4   :  { %v812_v4 = vand.u32 127, %v25_v2  ;;  %vm31_vm0 = vcmp.ge.s32.totalorder %v21_v6, 4  ;;  %v832_v21 = vld [vmem:[%s954_s3] sm:$0xff] }
   0x6   :  { %v34_v7 = vor.u32 %v33_v5, %v812_v4 }
  0x7d   :  { %v29_v8 = vpop.permute.xlu0 %28 }
  0x7e   :  { %vm30_vm1 = vcmp.lt.s32.totalorder %v812_v4, %v29_v8 }
  0x7f   :  { %vm819_vm2 = vmand %vm30_vm1, %vm31_vm0 }
  0x80   :  { %v825_v10 = vsel %vm819_vm2, %v34_v7, 2147483647 }
  0x81   :  { %vm36_vm3 = vcmp.lt.s32.totalorder %v825_v10, 1073741824 }
  0x82   :  { %v37_v11 = vsel %vm36_vm3, 1, %v771_v1 }
  0x83   :  { %v39_v12 = vshrl.u32 %v37_v11, 16  ;;  %v38_v13 = vand.u32 65535, %v37_v11 }
  0x85   :  { %v41_v14 = vcvt.s32.f32 %v39_v12  ;;  %v40_v15 = vcvt.s32.f32 %v38_v13 }
  0x87   :  { %44 = vadd.xlane.f32.xlu0 %v41_v14  ;;  %42 = vadd.xlane.f32.xlu1 %v40_v15 }
 0x110   :  { %v45_v16 = vpop.xlane.xlu0 %44  ;;  %v43_v17 = vpop.xlane.xlu1 %42 }
 0x111   :  { %v47_v18 = vcvt.f32.s32 %v45_v16  ;;  %v46_v20 = vcvt.f32.s32 %v43_v17 }
 0x113   :  { %v48_v19 = vshll.u32 %v47_v18, 16 }
 0x115   :  { %v49_v22 = vadd.s32 %v48_v19, %v46_v20 }
 0x117   :  { %vm50_vm4 = vcmp.lt.s32.totalorder %v49_v22, %v832_v21 }
 0x118   :  { %v51_v23 = vsel %vm50_vm4, 1073741824, %v771_v1 }
 0x119   :  { %v52_v24 = vor.u32 536870912, %v51_v23 }
 0x11b   :  { %54 = vperm.xlu1 %724, %v52_v24  }
 0x196   :  { %v55_v25 = vpop.permute.xlu1 %54 }
 0x197   :  { %vm56_vm5 = vcmp.lt.s32.totalorder %v825_v10, %v55_v25 }
 0x198   :  { %v57_v26 = vsel %vm56_vm5, 1, %v771_v1 }
 0x199   :  { %v59_v27 = vshrl.u32 %v57_v26, 16  ;;  %v58_v28 = vand.u32 65535, %v57_v26 }
 0x19b   :  { %v61_v29 = vcvt.s32.f32 %v59_v27  ;;  %v60_v30 = vcvt.s32.f32 %v58_v28 }
 0x19d   :  { %64 = vadd.xlane.f32.xlu1 %v61_v29  ;;  %62 = vadd.xlane.f32.xlu0 %v60_v30 }
 0x226   :  { %v65_v31 = vpop.xlane.xlu1 %64  ;;  %v63_v32 = vpop.xlane.xlu0 %62 }
 0x227   :  { %v67_v33 = vcvt.f32.s32 %v65_v31  ;;  %v66_v35 = vcvt.f32.s32 %v63_v32 }
 0x229   :  { %v68_v34 = vshll.u32 %v67_v33, 16 }
 0x22b   :  { %v69_v36 = vadd.s32 %v68_v34, %v66_v35 }
 0x22d   :  { %vm70_vm6 = vcmp.lt.s32.totalorder %v69_v36, %v832_v21 }
 0x22e   :  { %v71_v37 = vsel %vm70_vm6, %v52_v24, %v51_v23 }
 0x22f   :  { %v72_v38 = vor.u32 268435456, %v71_v37 }
 0x231   :  { %74 = vperm.xlu0 %723, %v72_v38  }
 0x2ac   :  { %v75_v39 = vpop.permute.xlu0 %74 }
 0x2ad   :  { %vm76_vm7 = vcmp.lt.s32.totalorder %v825_v10, %v75_v39 }
 0x2ae   :  { %v77_v40 = vsel %vm76_vm7, 1, %v771_v1 }
 0x2af   :  { %v79_v41 = vshrl.u32 %v77_v40, 16  ;;  %v78_v42 = vand.u32 65535, %v77_v40 }
 0x2b1   :  { %v81_v43 = vcvt.s32.f32 %v79_v41  ;;  %v80_v44 = vcvt.s32.f32 %v78_v42 }
 0x2b3   :  { %84 = vadd.xlane.f32.xlu1 %v81_v43  ;;  %82 = vadd.xlane.f32.xlu0 %v80_v44 }
 0x33c   :  { %v85_v45 = vpop.xlane.xlu1 %84  ;;  %v83_v46 = vpop.xlane.xlu0 %82 }
 0x33d   :  { %v87_v47 = vcvt.f32.s32 %v85_v45  ;;  %v86_v49 = vcvt.f32.s32 %v83_v46 }
 0x33f   :  { %v88_v48 = vshll.u32 %v87_v47, 16 }
 0x341   :  { %v89_v50 = vadd.s32 %v88_v48, %v86_v49 }
 0x343   :  { %vm90_vm8 = vcmp.lt.s32.totalorder %v89_v50, %v832_v21 }
 0x344   :  { %v91_v51 = vsel %vm90_vm8, %v72_v38, %v71_v37 }
 0x345   :  { %v92_v52 = vor.u32 134217728, %v91_v51 }
 0x347   :  { %94 = vperm.xlu1 %724, %v92_v52  }
 0x3c2   :  { %v95_v53 = vpop.permute.xlu1 %94 }
 0x3c3   :  { %vm96_vm9 = vcmp.lt.s32.totalorder %v825_v10, %v95_v53 }
 0x3c4   :  { %v97_v54 = vsel %vm96_vm9, 1, %v771_v1 }
 0x3c5   :  { %v99_v55 = vshrl.u32 %v97_v54, 16  ;;  %v98_v56 = vand.u32 65535, %v97_v54 }
 0x3c7   :  { %v101_v57 = vcvt.s32.f32 %v99_v55  ;;  %v100_v58 = vcvt.s32.f32 %v98_v56 }
 0x3c9   :  { %104 = vadd.xlane.f32.xlu1 %v101_v57  ;;  %102 = vadd.xlane.f32.xlu0 %v100_v58 }
 0x452   :  { %v105_v59 = vpop.xlane.xlu1 %104  ;;  %v103_v60 = vpop.xlane.xlu0 %102 }
 0x453   :  { %v107_v61 = vcvt.f32.s32 %v105_v59  ;;  %v106_v63 = vcvt.f32.s32 %v103_v60 }
 0x455   :  { %v108_v62 = vshll.u32 %v107_v61, 16 }
 0x457   :  { %v109_v0 = vadd.s32 %v108_v62, %v106_v63 }
 0x459   :  { %vm110_vm10 = vcmp.lt.s32.totalorder %v109_v0, %v832_v21 }
 0x45a   :  { %v111_v2 = vsel %vm110_vm10, %v92_v52, %v91_v51 }
 0x45b   :  { %v112_v3 = vor.u32 67108864, %v111_v2 }
 0x45d   :  { %114 = vperm.xlu0 %723, %v112_v3  }
 0x4d8   :  { %v115_v5 = vpop.permute.xlu0 %114 }
 0x4d9   :  { %vm116_vm11 = vcmp.lt.s32.totalorder %v825_v10, %v115_v5 }
 0x4da   :  { %v117_v6 = vsel %vm116_vm11, 1, %v771_v1 }
 0x4db   :  { %v119_v7 = vshrl.u32 %v117_v6, 16  ;;  %v118_v8 = vand.u32 65535, %v117_v6 }
 0x4dd   :  { %v121_v11 = vcvt.s32.f32 %v119_v7  ;;  %v120_v12 = vcvt.s32.f32 %v118_v8 }
 0x4df   :  { %124 = vadd.xlane.f32.xlu1 %v121_v11  ;;  %122 = vadd.xlane.f32.xlu0 %v120_v12 }
 0x568   :  { %v125_v13 = vpop.xlane.xlu1 %124  ;;  %v123_v14 = vpop.xlane.xlu0 %122 }
 0x569   :  { %v127_v15 = vcvt.f32.s32 %v125_v13  ;;  %v126_v17 = vcvt.f32.s32 %v123_v14 }
 0x56b   :  { %v128_v16 = vshll.u32 %v127_v15, 16 }
 0x56d   :  { %v129_v18 = vadd.s32 %v128_v16, %v126_v17 }
 0x56f   :  { %vm130_vm12 = vcmp.lt.s32.totalorder %v129_v18, %v832_v21 }
 0x570   :  { %v131_v19 = vsel %vm130_vm12, %v112_v3, %v111_v2 }
 0x571   :  { %v132_v20 = vor.u32 33554432, %v131_v19 }
 0x573   :  { %134 = vperm.xlu1 %724, %v132_v20  }
 0x5ee   :  { %v135_v22 = vpop.permute.xlu1 %134 }
 0x5ef   :  { %vm136_vm13 = vcmp.lt.s32.totalorder %v825_v10, %v135_v22 }
 0x5f0   :  { %v137_v23 = vsel %vm136_vm13, 1, %v771_v1 }
 0x5f1   :  { %v139_v24 = vshrl.u32 %v137_v23, 16  ;;  %v138_v25 = vand.u32 65535, %v137_v23 }
 0x5f3   :  { %v141_v26 = vcvt.s32.f32 %v139_v24  ;;  %v140_v27 = vcvt.s32.f32 %v138_v25 }
 0x5f5   :  { %144 = vadd.xlane.f32.xlu1 %v141_v26  ;;  %142 = vadd.xlane.f32.xlu0 %v140_v27 }
 0x67e   :  { %v145_v28 = vpop.xlane.xlu1 %144  ;;  %v143_v29 = vpop.xlane.xlu0 %142 }
 0x67f   :  { %v147_v30 = vcvt.f32.s32 %v145_v28  ;;  %v146_v32 = vcvt.f32.s32 %v143_v29 }
 0x681   :  { %v148_v31 = vshll.u32 %v147_v30, 16 }
 0x683   :  { %v149_v33 = vadd.s32 %v148_v31, %v146_v32 }
 0x685   :  { %vm150_vm14 = vcmp.lt.s32.totalorder %v149_v33, %v832_v21 }
 0x686   :  { %v151_v34 = vsel %vm150_vm14, %v132_v20, %v131_v19 }
 0x687   :  { %v152_v35 = vor.u32 16777216, %v151_v34 }
 0x689   :  { %154 = vperm.xlu0 %723, %v152_v35  }
 0x704   :  { %v155_v36 = vpop.permute.xlu0 %154 }
 0x705   :  { %vm156_vm15 = vcmp.lt.s32.totalorder %v825_v10, %v155_v36 }
 0x706   :  { %v157_v37 = vsel %vm156_vm15, 1, %v771_v1 }
 0x707   :  { %v159_v38 = vshrl.u32 %v157_v37, 16  ;;  %v158_v39 = vand.u32 65535, %v157_v37 }
 0x709   :  { %v161_v40 = vcvt.s32.f32 %v159_v38  ;;  %v160_v41 = vcvt.s32.f32 %v158_v39 }
 0x70b   :  { %164 = vadd.xlane.f32.xlu1 %v161_v40  ;;  %162 = vadd.xlane.f32.xlu0 %v160_v41 }
 0x794   :  { %v165_v42 = vpop.xlane.xlu1 %164  ;;  %v163_v43 = vpop.xlane.xlu0 %162 }
 0x795   :  { %v167_v44 = vcvt.f32.s32 %v165_v42  ;;  %v166_v46 = vcvt.f32.s32 %v163_v43 }
 0x797   :  { %v168_v45 = vshll.u32 %v167_v44, 16 }
 0x799   :  { %v169_v47 = vadd.s32 %v168_v45, %v166_v46 }
 0x79b   :  { %vm170_vm0 = vcmp.lt.s32.totalorder %v169_v47, %v832_v21 }
 0x79c   :  { %v171_v48 = vsel %vm170_vm0, %v152_v35, %v151_v34 }
 0x79d   :  { %v172_v49 = vor.u32 8388608, %v171_v48 }
 0x79f   :  { %174 = vperm.xlu1 %724, %v172_v49  }
 0x81a   :  { %v175_v50 = vpop.permute.xlu1 %174 }
 0x81b   :  { %vm176_vm1 = vcmp.lt.s32.totalorder %v825_v10, %v175_v50 }
 0x81c   :  { %v177_v51 = vsel %vm176_vm1, 1, %v771_v1 }
 0x81d   :  { %v179_v52 = vshrl.u32 %v177_v51, 16  ;;  %v178_v53 = vand.u32 65535, %v177_v51 }
 0x81f   :  { %v181_v54 = vcvt.s32.f32 %v179_v52  ;;  %v180_v55 = vcvt.s32.f32 %v178_v53 }
 0x821   :  { %184 = vadd.xlane.f32.xlu1 %v181_v54  ;;  %182 = vadd.xlane.f32.xlu0 %v180_v55 }
 0x8aa   :  { %v185_v56 = vpop.xlane.xlu1 %184  ;;  %v183_v57 = vpop.xlane.xlu0 %182 }
 0x8ab   :  { %v187_v58 = vcvt.f32.s32 %v185_v56  ;;  %v186_v60 = vcvt.f32.s32 %v183_v57 }
 0x8ad   :  { %v188_v59 = vshll.u32 %v187_v58, 16 }
 0x8af   :  { %v189_v61 = vadd.s32 %v188_v59, %v186_v60 }
 0x8b1   :  { %vm190_vm3 = vcmp.lt.s32.totalorder %v189_v61, %v832_v21 }
 0x8b2   :  { %v191_v62 = vsel %vm190_vm3, %v172_v49, %v171_v48 }
 0x8b3   :  { %v192_v63 = vor.u32 4194304, %v191_v62 }
 0x8b5   :  { %194 = vperm.xlu0 %723, %v192_v63  }
 0x930   :  { %v195_v0 = vpop.permute.xlu0 %194 }
 0x931   :  { %vm196_vm4 = vcmp.lt.s32.totalorder %v825_v10, %v195_v0 }
 0x932   :  { %v197_v2 = vsel %vm196_vm4, 1, %v771_v1 }
 0x933   :  { %v199_v3 = vshrl.u32 %v197_v2, 16  ;;  %v198_v5 = vand.u32 65535, %v197_v2 }
 0x935   :  { %v201_v6 = vcvt.s32.f32 %v199_v3  ;;  %v200_v7 = vcvt.s32.f32 %v198_v5 }
 0x937   :  { %204 = vadd.xlane.f32.xlu1 %v201_v6  ;;  %202 = vadd.xlane.f32.xlu0 %v200_v7 }
 0x9c0   :  { %v205_v8 = vpop.xlane.xlu1 %204  ;;  %v203_v11 = vpop.xlane.xlu0 %202 }
 0x9c1   :  { %v207_v12 = vcvt.f32.s32 %v205_v8  ;;  %v206_v14 = vcvt.f32.s32 %v203_v11 }
 0x9c3   :  { %v208_v13 = vshll.u32 %v207_v12, 16 }
 0x9c5   :  { %v209_v15 = vadd.s32 %v208_v13, %v206_v14 }
 0x9c7   :  { %vm210_vm5 = vcmp.lt.s32.totalorder %v209_v15, %v832_v21 }
 0x9c8   :  { %v211_v16 = vsel %vm210_vm5, %v192_v63, %v191_v62 }
 0x9c9   :  { %v212_v17 = vor.u32 2097152, %v211_v16 }
 0x9cb   :  { %214 = vperm.xlu1 %724, %v212_v17  }
 0xa46   :  { %v215_v18 = vpop.permute.xlu1 %214 }
 0xa47   :  { %vm216_vm6 = vcmp.lt.s32.totalorder %v825_v10, %v215_v18 }
 0xa48   :  { %v217_v19 = vsel %vm216_vm6, 1, %v771_v1 }
 0xa49   :  { %v219_v20 = vshrl.u32 %v217_v19, 16  ;;  %v218_v22 = vand.u32 65535, %v217_v19 }
 0xa4b   :  { %v221_v23 = vcvt.s32.f32 %v219_v20  ;;  %v220_v24 = vcvt.s32.f32 %v218_v22 }
 0xa4d   :  { %224 = vadd.xlane.f32.xlu1 %v221_v23  ;;  %222 = vadd.xlane.f32.xlu0 %v220_v24 }
 0xad6   :  { %v225_v25 = vpop.xlane.xlu1 %224  ;;  %v223_v26 = vpop.xlane.xlu0 %222 }
 0xad7   :  { %v227_v27 = vcvt.f32.s32 %v225_v25  ;;  %v226_v29 = vcvt.f32.s32 %v223_v26 }
 0xad9   :  { %v228_v28 = vshll.u32 %v227_v27, 16 }
 0xadb   :  { %v229_v30 = vadd.s32 %v228_v28, %v226_v29 }
 0xadd   :  { %vm230_vm7 = vcmp.lt.s32.totalorder %v229_v30, %v832_v21 }
 0xade   :  { %v231_v31 = vsel %vm230_vm7, %v212_v17, %v211_v16 }
 0xadf   :  { %v232_v32 = vor.u32 1048576, %v231_v31 }
 0xae1   :  { %234 = vperm.xlu0 %723, %v232_v32  }
 0xb5c   :  { %v235_v33 = vpop.permute.xlu0 %234 }
 0xb5d   :  { %vm236_vm8 = vcmp.lt.s32.totalorder %v825_v10, %v235_v33 }
 0xb5e   :  { %v237_v34 = vsel %vm236_vm8, 1, %v771_v1 }
 0xb5f   :  { %v239_v35 = vshrl.u32 %v237_v34, 16  ;;  %v238_v36 = vand.u32 65535, %v237_v34 }
 0xb61   :  { %v241_v37 = vcvt.s32.f32 %v239_v35  ;;  %v240_v38 = vcvt.s32.f32 %v238_v36 }
 0xb63   :  { %244 = vadd.xlane.f32.xlu1 %v241_v37  ;;  %242 = vadd.xlane.f32.xlu0 %v240_v38 }
 0xbec   :  { %v245_v39 = vpop.xlane.xlu1 %244  ;;  %v243_v40 = vpop.xlane.xlu0 %242 }
 0xbed   :  { %v247_v41 = vcvt.f32.s32 %v245_v39  ;;  %v246_v43 = vcvt.f32.s32 %v243_v40 }
 0xbef   :  { %v248_v42 = vshll.u32 %v247_v41, 16 }
 0xbf1   :  { %v249_v44 = vadd.s32 %v248_v42, %v246_v43 }
 0xbf3   :  { %vm250_vm9 = vcmp.lt.s32.totalorder %v249_v44, %v832_v21 }
 0xbf4   :  { %v251_v45 = vsel %vm250_vm9, %v232_v32, %v231_v31 }
 0xbf5   :  { %v252_v46 = vor.u32 524288, %v251_v45 }
 0xbf7   :  { %254 = vperm.xlu1 %724, %v252_v46  }
 0xc72   :  { %v255_v47 = vpop.permute.xlu1 %254 }
 0xc73   :  { %vm256_vm10 = vcmp.lt.s32.totalorder %v825_v10, %v255_v47 }
 0xc74   :  { %v257_v48 = vsel %vm256_vm10, 1, %v771_v1 }
 0xc75   :  { %v259_v49 = vshrl.u32 %v257_v48, 16  ;;  %v258_v50 = vand.u32 65535, %v257_v48 }
 0xc77   :  { %v261_v51 = vcvt.s32.f32 %v259_v49  ;;  %v260_v52 = vcvt.s32.f32 %v258_v50 }
 0xc79   :  { %264 = vadd.xlane.f32.xlu1 %v261_v51  ;;  %262 = vadd.xlane.f32.xlu0 %v260_v52 }
 0xd02   :  { %v265_v53 = vpop.xlane.xlu1 %264  ;;  %v263_v54 = vpop.xlane.xlu0 %262 }
 0xd03   :  { %v267_v55 = vcvt.f32.s32 %v265_v53  ;;  %v266_v57 = vcvt.f32.s32 %v263_v54 }
 0xd05   :  { %v268_v56 = vshll.u32 %v267_v55, 16 }
 0xd07   :  { %v269_v58 = vadd.s32 %v268_v56, %v266_v57 }
 0xd09   :  { %vm270_vm11 = vcmp.lt.s32.totalorder %v269_v58, %v832_v21 }
 0xd0a   :  { %v271_v59 = vsel %vm270_vm11, %v252_v46, %v251_v45 }
 0xd0b   :  { %v272_v60 = vor.u32 262144, %v271_v59 }
 0xd0d   :  { %274 = vperm.xlu0 %723, %v272_v60  }
 0xd88   :  { %v275_v61 = vpop.permute.xlu0 %274 }
 0xd89   :  { %vm276_vm12 = vcmp.lt.s32.totalorder %v825_v10, %v275_v61 }
 0xd8a   :  { %v277_v62 = vsel %vm276_vm12, 1, %v771_v1 }
 0xd8b   :  { %v279_v63 = vshrl.u32 %v277_v62, 16  ;;  %v278_v0 = vand.u32 65535, %v277_v62 }
 0xd8d   :  { %v281_v2 = vcvt.s32.f32 %v279_v63  ;;  %v280_v3 = vcvt.s32.f32 %v278_v0 }
 0xd8f   :  { %284 = vadd.xlane.f32.xlu1 %v281_v2  ;;  %282 = vadd.xlane.f32.xlu0 %v280_v3 }
 0xe18   :  { %v285_v5 = vpop.xlane.xlu1 %284  ;;  %v283_v6 = vpop.xlane.xlu0 %282 }
 0xe19   :  { %v287_v7 = vcvt.f32.s32 %v285_v5  ;;  %v286_v11 = vcvt.f32.s32 %v283_v6 }
 0xe1b   :  { %v288_v8 = vshll.u32 %v287_v7, 16 }
 0xe1d   :  { %v289_v12 = vadd.s32 %v288_v8, %v286_v11 }
 0xe1f   :  { %vm290_vm13 = vcmp.lt.s32.totalorder %v289_v12, %v832_v21 }
 0xe20   :  { %v291_v13 = vsel %vm290_vm13, %v272_v60, %v271_v59 }
 0xe21   :  { %v292_v14 = vor.u32 131072, %v291_v13 }
 0xe23   :  { %294 = vperm.xlu1 %724, %v292_v14  }
 0xe9e   :  { %v295_v15 = vpop.permute.xlu1 %294 }
 0xe9f   :  { %vm296_vm14 = vcmp.lt.s32.totalorder %v825_v10, %v295_v15 }
 0xea0   :  { %v297_v16 = vsel %vm296_vm14, 1, %v771_v1 }
 0xea1   :  { %v299_v17 = vshrl.u32 %v297_v16, 16  ;;  %v298_v18 = vand.u32 65535, %v297_v16 }
 0xea3   :  { %v301_v19 = vcvt.s32.f32 %v299_v17  ;;  %v300_v20 = vcvt.s32.f32 %v298_v18 }
 0xea5   :  { %304 = vadd.xlane.f32.xlu1 %v301_v19  ;;  %302 = vadd.xlane.f32.xlu0 %v300_v20 }
 0xf2e   :  { %v305_v22 = vpop.xlane.xlu1 %304  ;;  %v303_v23 = vpop.xlane.xlu0 %302 }
 0xf2f   :  { %v307_v24 = vcvt.f32.s32 %v305_v22  ;;  %v306_v26 = vcvt.f32.s32 %v303_v23 }
 0xf31   :  { %v308_v25 = vshll.u32 %v307_v24, 16 }
 0xf33   :  { %v309_v27 = vadd.s32 %v308_v25, %v306_v26 }
 0xf35   :  { %vm310_vm15 = vcmp.lt.s32.totalorder %v309_v27, %v832_v21 }
 0xf36   :  { %v311_v28 = vsel %vm310_vm15, %v292_v14, %v291_v13 }
 0xf37   :  { %v312_v29 = vor.u32 65536, %v311_v28 }
 0xf39   :  { %314 = vperm.xlu0 %723, %v312_v29  }
 0xfb4   :  { %v315_v30 = vpop.permute.xlu0 %314 }
 0xfb5   :  { %vm316_vm0 = vcmp.lt.s32.totalorder %v825_v10, %v315_v30 }
 0xfb6   :  { %v317_v31 = vsel %vm316_vm0, 1, %v771_v1 }
 0xfb7   :  { %v319_v32 = vshrl.u32 %v317_v31, 16  ;;  %v318_v33 = vand.u32 65535, %v317_v31 }
 0xfb9   :  { %v321_v34 = vcvt.s32.f32 %v319_v32  ;;  %v320_v35 = vcvt.s32.f32 %v318_v33 }
 0xfbb   :  { %324 = vadd.xlane.f32.xlu1 %v321_v34  ;;  %322 = vadd.xlane.f32.xlu0 %v320_v35 }
0x1044   :  { %v325_v36 = vpop.xlane.xlu1 %324  ;;  %v323_v37 = vpop.xlane.xlu0 %322 }
0x1045   :  { %v327_v38 = vcvt.f32.s32 %v325_v36  ;;  %v326_v40 = vcvt.f32.s32 %v323_v37 }
0x1047   :  { %v328_v39 = vshll.u32 %v327_v38, 16 }
0x1049   :  { %v329_v41 = vadd.s32 %v328_v39, %v326_v40 }
0x104b   :  { %vm330_vm1 = vcmp.lt.s32.totalorder %v329_v41, %v832_v21 }
0x104c   :  { %v331_v42 = vsel %vm330_vm1, %v312_v29, %v311_v28 }
0x104d   :  { %v332_v43 = vor.u32 32768, %v331_v42 }
0x104f   :  { %334 = vperm.xlu1 %724, %v332_v43  }
0x10ca   :  { %v335_v44 = vpop.permute.xlu1 %334 }
0x10cb   :  { %vm336_vm3 = vcmp.lt.s32.totalorder %v825_v10, %v335_v44 }
0x10cc   :  { %v337_v45 = vsel %vm336_vm3, 1, %v771_v1 }
0x10cd   :  { %v339_v46 = vshrl.u32 %v337_v45, 16  ;;  %v338_v47 = vand.u32 65535, %v337_v45 }
0x10cf   :  { %v341_v48 = vcvt.s32.f32 %v339_v46  ;;  %v340_v49 = vcvt.s32.f32 %v338_v47 }
0x10d1   :  { %344 = vadd.xlane.f32.xlu1 %v341_v48  ;;  %342 = vadd.xlane.f32.xlu0 %v340_v49 }
0x115a   :  { %v345_v50 = vpop.xlane.xlu1 %344  ;;  %v343_v51 = vpop.xlane.xlu0 %342 }
0x115b   :  { %v347_v52 = vcvt.f32.s32 %v345_v50  ;;  %v346_v54 = vcvt.f32.s32 %v343_v51 }
0x115d   :  { %v348_v53 = vshll.u32 %v347_v52, 16 }
0x115f   :  { %v349_v55 = vadd.s32 %v348_v53, %v346_v54 }
0x1161   :  { %vm350_vm4 = vcmp.lt.s32.totalorder %v349_v55, %v832_v21 }
0x1162   :  { %v351_v56 = vsel %vm350_vm4, %v332_v43, %v331_v42 }
0x1163   :  { %v352_v57 = vor.u32 16384, %v351_v56 }
0x1165   :  { %354 = vperm.xlu0 %723, %v352_v57  }
0x11e0   :  { %v355_v58 = vpop.permute.xlu0 %354 }
0x11e1   :  { %vm356_vm5 = vcmp.lt.s32.totalorder %v825_v10, %v355_v58 }
0x11e2   :  { %v357_v59 = vsel %vm356_vm5, 1, %v771_v1 }
0x11e3   :  { %v359_v60 = vshrl.u32 %v357_v59, 16  ;;  %v358_v61 = vand.u32 65535, %v357_v59 }
0x11e5   :  { %v361_v62 = vcvt.s32.f32 %v359_v60  ;;  %v360_v63 = vcvt.s32.f32 %v358_v61 }
0x11e7   :  { %364 = vadd.xlane.f32.xlu1 %v361_v62  ;;  %362 = vadd.xlane.f32.xlu0 %v360_v63 }
0x1270   :  { %v365_v0 = vpop.xlane.xlu1 %364  ;;  %v363_v2 = vpop.xlane.xlu0 %362 }
0x1271   :  { %v367_v3 = vcvt.f32.s32 %v365_v0  ;;  %v366_v6 = vcvt.f32.s32 %v363_v2 }
0x1273   :  { %v368_v5 = vshll.u32 %v367_v3, 16 }
0x1275   :  { %v369_v7 = vadd.s32 %v368_v5, %v366_v6 }
0x1277   :  { %vm370_vm6 = vcmp.lt.s32.totalorder %v369_v7, %v832_v21 }
0x1278   :  { %v371_v8 = vsel %vm370_vm6, %v352_v57, %v351_v56 }
0x1279   :  { %v372_v11 = vor.u32 8192, %v371_v8 }
0x127b   :  { %374 = vperm.xlu1 %724, %v372_v11  }
0x12f6   :  { %v375_v12 = vpop.permute.xlu1 %374 }
0x12f7   :  { %vm376_vm7 = vcmp.lt.s32.totalorder %v825_v10, %v375_v12 }
0x12f8   :  { %v377_v13 = vsel %vm376_vm7, 1, %v771_v1 }
0x12f9   :  { %v379_v14 = vshrl.u32 %v377_v13, 16  ;;  %v378_v15 = vand.u32 65535, %v377_v13 }
0x12fb   :  { %v381_v16 = vcvt.s32.f32 %v379_v14  ;;  %v380_v17 = vcvt.s32.f32 %v378_v15 }
0x12fd   :  { %384 = vadd.xlane.f32.xlu1 %v381_v16  ;;  %382 = vadd.xlane.f32.xlu0 %v380_v17 }
0x1386   :  { %v385_v18 = vpop.xlane.xlu1 %384  ;;  %v383_v19 = vpop.xlane.xlu0 %382 }
0x1387   :  { %v387_v20 = vcvt.f32.s32 %v385_v18  ;;  %v386_v23 = vcvt.f32.s32 %v383_v19 }
0x1389   :  { %v388_v22 = vshll.u32 %v387_v20, 16 }
0x138b   :  { %v389_v24 = vadd.s32 %v388_v22, %v386_v23 }
0x138d   :  { %vm390_vm8 = vcmp.lt.s32.totalorder %v389_v24, %v832_v21 }
0x138e   :  { %v391_v25 = vsel %vm390_vm8, %v372_v11, %v371_v8 }
0x138f   :  { %v392_v26 = vor.u32 4096, %v391_v25 }
0x1391   :  { %394 = vperm.xlu0 %723, %v392_v26  }
0x140c   :  { %v395_v27 = vpop.permute.xlu0 %394 }
0x140d   :  { %vm396_vm9 = vcmp.lt.s32.totalorder %v825_v10, %v395_v27 }
0x140e   :  { %v397_v28 = vsel %vm396_vm9, 1, %v771_v1 }
0x140f   :  { %v399_v29 = vshrl.u32 %v397_v28, 16  ;;  %v398_v30 = vand.u32 65535, %v397_v28 }
0x1411   :  { %v401_v31 = vcvt.s32.f32 %v399_v29  ;;  %v400_v32 = vcvt.s32.f32 %v398_v30 }
0x1413   :  { %404 = vadd.xlane.f32.xlu1 %v401_v31  ;;  %402 = vadd.xlane.f32.xlu0 %v400_v32 }
0x149c   :  { %v405_v33 = vpop.xlane.xlu1 %404  ;;  %v403_v34 = vpop.xlane.xlu0 %402 }
0x149d   :  { %v407_v35 = vcvt.f32.s32 %v405_v33  ;;  %v406_v37 = vcvt.f32.s32 %v403_v34 }
0x149f   :  { %v408_v36 = vshll.u32 %v407_v35, 16 }
0x14a1   :  { %v409_v38 = vadd.s32 %v408_v36, %v406_v37 }
0x14a3   :  { %vm410_vm10 = vcmp.lt.s32.totalorder %v409_v38, %v832_v21 }
0x14a4   :  { %v411_v39 = vsel %vm410_vm10, %v392_v26, %v391_v25 }
0x14a5   :  { %v412_v40 = vor.u32 2048, %v411_v39 }
0x14a7   :  { %414 = vperm.xlu1 %724, %v412_v40  }
0x1522   :  { %v415_v41 = vpop.permute.xlu1 %414 }
0x1523   :  { %vm416_vm11 = vcmp.lt.s32.totalorder %v825_v10, %v415_v41 }
0x1524   :  { %v417_v42 = vsel %vm416_vm11, 1, %v771_v1 }
0x1525   :  { %v419_v43 = vshrl.u32 %v417_v42, 16  ;;  %v418_v44 = vand.u32 65535, %v417_v42 }
0x1527   :  { %v421_v45 = vcvt.s32.f32 %v419_v43  ;;  %v420_v46 = vcvt.s32.f32 %v418_v44 }
0x1529   :  { %424 = vadd.xlane.f32.xlu1 %v421_v45  ;;  %422 = vadd.xlane.f32.xlu0 %v420_v46 }
0x15b2   :  { %v425_v47 = vpop.xlane.xlu1 %424  ;;  %v423_v48 = vpop.xlane.xlu0 %422 }
0x15b3   :  { %v427_v49 = vcvt.f32.s32 %v425_v47  ;;  %v426_v51 = vcvt.f32.s32 %v423_v48 }
0x15b5   :  { %v428_v50 = vshll.u32 %v427_v49, 16 }
0x15b7   :  { %v429_v52 = vadd.s32 %v428_v50, %v426_v51 }
0x15b9   :  { %vm430_vm12 = vcmp.lt.s32.totalorder %v429_v52, %v832_v21 }
0x15ba   :  { %v431_v53 = vsel %vm430_vm12, %v412_v40, %v411_v39 }
0x15bb   :  { %v432_v54 = vor.u32 1024, %v431_v53 }
0x15bd   :  { %434 = vperm.xlu0 %723, %v432_v54  }
0x1638   :  { %v435_v55 = vpop.permute.xlu0 %434 }
0x1639   :  { %vm436_vm13 = vcmp.lt.s32.totalorder %v825_v10, %v435_v55 }
0x163a   :  { %v437_v56 = vsel %vm436_vm13, 1, %v771_v1 }
0x163b   :  { %v439_v57 = vshrl.u32 %v437_v56, 16  ;;  %v438_v58 = vand.u32 65535, %v437_v56 }
0x163d   :  { %v441_v59 = vcvt.s32.f32 %v439_v57  ;;  %v440_v60 = vcvt.s32.f32 %v438_v58 }
0x163f   :  { %444 = vadd.xlane.f32.xlu1 %v441_v59  ;;  %442 = vadd.xlane.f32.xlu0 %v440_v60 }
0x16c8   :  { %v445_v61 = vpop.xlane.xlu1 %444  ;;  %v443_v62 = vpop.xlane.xlu0 %442 }
0x16c9   :  { %v447_v63 = vcvt.f32.s32 %v445_v61  ;;  %v446_v2 = vcvt.f32.s32 %v443_v62 }
0x16cb   :  { %v448_v0 = vshll.u32 %v447_v63, 16 }
0x16cd   :  { %v449_v3 = vadd.s32 %v448_v0, %v446_v2 }
0x16cf   :  { %vm450_vm14 = vcmp.lt.s32.totalorder %v449_v3, %v832_v21 }
0x16d0   :  { %v451_v5 = vsel %vm450_vm14, %v432_v54, %v431_v53 }
0x16d1   :  { %v452_v6 = vor.u32 512, %v451_v5 }
0x16d3   :  { %454 = vperm.xlu1 %724, %v452_v6  }
0x174e   :  { %v455_v7 = vpop.permute.xlu1 %454 }
0x174f   :  { %vm456_vm15 = vcmp.lt.s32.totalorder %v825_v10, %v455_v7 }
0x1750   :  { %v457_v8 = vsel %vm456_vm15, 1, %v771_v1 }
0x1751   :  { %v459_v11 = vshrl.u32 %v457_v8, 16  ;;  %v458_v12 = vand.u32 65535, %v457_v8 }
0x1753   :  { %v461_v13 = vcvt.s32.f32 %v459_v11  ;;  %v460_v14 = vcvt.s32.f32 %v458_v12 }
0x1755   :  { %464 = vadd.xlane.f32.xlu1 %v461_v13  ;;  %462 = vadd.xlane.f32.xlu0 %v460_v14 }
0x17de   :  { %v465_v15 = vpop.xlane.xlu1 %464  ;;  %v463_v16 = vpop.xlane.xlu0 %462 }
0x17df   :  { %v467_v17 = vcvt.f32.s32 %v465_v15  ;;  %v466_v19 = vcvt.f32.s32 %v463_v16 }
0x17e1   :  { %v468_v18 = vshll.u32 %v467_v17, 16 }
0x17e3   :  { %v469_v20 = vadd.s32 %v468_v18, %v466_v19 }
0x17e5   :  { %vm470_vm0 = vcmp.lt.s32.totalorder %v469_v20, %v832_v21 }
0x17e6   :  { %v471_v22 = vsel %vm470_vm0, %v452_v6, %v451_v5 }
0x17e7   :  { %v472_v23 = vor.u32 256, %v471_v22 }
0x17e9   :  { %474 = vperm.xlu0 %723, %v472_v23  }
0x1864   :  { %v475_v24 = vpop.permute.xlu0 %474 }
0x1865   :  { %vm476_vm1 = vcmp.lt.s32.totalorder %v825_v10, %v475_v24 }
0x1866   :  { %v477_v25 = vsel %vm476_vm1, 1, %v771_v1 }
0x1867   :  { %v479_v26 = vshrl.u32 %v477_v25, 16  ;;  %v478_v27 = vand.u32 65535, %v477_v25 }
0x1869   :  { %v481_v28 = vcvt.s32.f32 %v479_v26  ;;  %v480_v29 = vcvt.s32.f32 %v478_v27 }
0x186b   :  { %484 = vadd.xlane.f32.xlu1 %v481_v28  ;;  %482 = vadd.xlane.f32.xlu0 %v480_v29 }
0x18f4   :  { %v485_v30 = vpop.xlane.xlu1 %484  ;;  %v483_v31 = vpop.xlane.xlu0 %482 }
0x18f5   :  { %v487_v32 = vcvt.f32.s32 %v485_v30  ;;  %v486_v34 = vcvt.f32.s32 %v483_v31 }
0x18f7   :  { %v488_v33 = vshll.u32 %v487_v32, 16 }
0x18f9   :  { %v489_v35 = vadd.s32 %v488_v33, %v486_v34 }
0x18fb   :  { %vm490_vm3 = vcmp.lt.s32.totalorder %v489_v35, %v832_v21 }
0x18fc   :  { %v491_v36 = vsel %vm490_vm3, %v472_v23, %v471_v22 }
0x18fd   :  { %v492_v37 = vor.u32 128, %v491_v36 }
0x18ff   :  { %494 = vperm.xlu1 %724, %v492_v37  }
0x197a   :  { %v495_v38 = vpop.permute.xlu1 %494 }
0x197b   :  { %vm496_vm4 = vcmp.lt.s32.totalorder %v825_v10, %v495_v38 }
0x197c   :  { %v497_v39 = vsel %vm496_vm4, 1, %v771_v1 }
0x197d   :  { %v499_v40 = vshrl.u32 %v497_v39, 16  ;;  %v498_v41 = vand.u32 65535, %v497_v39 }
0x197f   :  { %v501_v42 = vcvt.s32.f32 %v499_v40  ;;  %v500_v43 = vcvt.s32.f32 %v498_v41 }
0x1981   :  { %504 = vadd.xlane.f32.xlu1 %v501_v42  ;;  %502 = vadd.xlane.f32.xlu0 %v500_v43 }
0x1a0a   :  { %v505_v44 = vpop.xlane.xlu1 %504  ;;  %v503_v45 = vpop.xlane.xlu0 %502 }
0x1a0b   :  { %v507_v46 = vcvt.f32.s32 %v505_v44  ;;  %v506_v48 = vcvt.f32.s32 %v503_v45 }
0x1a0d   :  { %v508_v47 = vshll.u32 %v507_v46, 16  ;;  %v919_v46 = vld [vmem:[%s954_s3] sm:$0xff]  ;;  %s772_s3 = smov [#allocation2]  }
0x1a0e   :  { %vm657_vm4 = vcmp.gt.s32.totalorder %v919_v46, 0  ;;  %s698_s26 = sshll.u32 %s772_s3, 4  ;;  %s699_s26 = int_to_ptr.vmem [resolvable:$true] %s698_s26 }
0x1a0f   :  { %v509_v49 = vadd.s32 %v508_v47, %v506_v48  ;;  %s727_s6 = scalar_lea.vmem %s699_s26, 128  ;;  %p732_p1 = scmp.lt.s32.totalorder %s699_s26, %s699_s26 }
0x1a10   :  { %p728_p0 = scmp.ne.s32.totalorder %s699_s26, %s727_s6  ;;  %p733_p2 = scmp.lt.s32.totalorder %s727_s6, %s727_s6 }
0x1a11   :  { %vm510_vm5 = vcmp.lt.s32.totalorder %v509_v49, %v832_v21 }
0x1a12   :  { %v511_v50 = vsel %vm510_vm5, %v492_v37, %v491_v36  ;;  %p734_p3 = por %p733_p2, %p732_p1 }
0x1a13   :  { %v512_v51 = vor.u32 64, %v511_v50 }
0x1a14   :  { %p735_p4 = pnand %p734_p3, %p728_p0 }
0x1a15   :  { %514 = vperm.xlu0 %723, %v512_v51  }
0x1a90   :  { %v515_v52 = vpop.permute.xlu0 %514 }
0x1a91   :  { %vm516_vm6 = vcmp.lt.s32.totalorder %v825_v10, %v515_v52 }
0x1a92   :  { %v517_v53 = vsel %vm516_vm6, 1, %v771_v1  ;;  %vm677_vm6 = vcmp.eq.s32.totalorder %v919_v46, 0 }
0x1a93   :  { %v519_v54 = vshrl.u32 %v517_v53, 16  ;;  %v518_v55 = vand.u32 65535, %v517_v53 }
0x1a95   :  { %v521_v56 = vcvt.s32.f32 %v519_v54  ;;  %v520_v57 = vcvt.s32.f32 %v518_v55 }
0x1a97   :  { %524 = vadd.xlane.f32.xlu1 %v521_v56  ;;  %522 = vadd.xlane.f32.xlu0 %v520_v57 }
0x1b20   :  { %v525_v58 = vpop.xlane.xlu1 %524  ;;  %v523_v59 = vpop.xlane.xlu0 %522 }
0x1b21   :  { %v527_v60 = vcvt.f32.s32 %v525_v58  ;;  %v526_v62 = vcvt.f32.s32 %v523_v59 }
0x1b23   :  { %v528_v61 = vshll.u32 %v527_v60, 16 }
0x1b25   :  { %v529_v63 = vadd.s32 %v528_v61, %v526_v62 }
0x1b27   :  { %vm530_vm7 = vcmp.lt.s32.totalorder %v529_v63, %v832_v21 }
0x1b28   :  { %v531_v0 = vsel %vm530_vm7, %v512_v51, %v511_v50 }
0x1b29   :  { %v532_v2 = vor.u32 32, %v531_v0 }
0x1b2b   :  { %534 = vperm.xlu1 %724, %v532_v2  }
0x1ba6   :  { %v535_v3 = vpop.permute.xlu1 %534 }
0x1ba7   :  { %vm536_vm8 = vcmp.lt.s32.totalorder %v825_v10, %v535_v3 }
0x1ba8   :  { %v537_v5 = vsel %vm536_vm8, 1, %v771_v1 }
0x1ba9   :  { %v539_v6 = vshrl.u32 %v537_v5, 16  ;;  %v538_v7 = vand.u32 65535, %v537_v5 }
0x1bab   :  { %v541_v8 = vcvt.s32.f32 %v539_v6  ;;  %v540_v11 = vcvt.s32.f32 %v538_v7 }
0x1bad   :  { %544 = vadd.xlane.f32.xlu1 %v541_v8  ;;  %542 = vadd.xlane.f32.xlu0 %v540_v11 }
0x1c36   :  { %v545_v12 = vpop.xlane.xlu1 %544  ;;  %v543_v13 = vpop.xlane.xlu0 %542 }
0x1c37   :  { %v547_v14 = vcvt.f32.s32 %v545_v12  ;;  %v546_v16 = vcvt.f32.s32 %v543_v13 }
0x1c39   :  { %v548_v15 = vshll.u32 %v547_v14, 16 }
0x1c3b   :  { %v549_v17 = vadd.s32 %v548_v15, %v546_v16 }
0x1c3d   :  { %vm550_vm9 = vcmp.lt.s32.totalorder %v549_v17, %v832_v21  ;;  %v664_v17 = vsel %vm819_vm2, 1, %v771_v1 }
0x1c3e   :  { %v551_v18 = vsel %vm550_vm9, %v532_v2, %v531_v0 }
0x1c3f   :  { %v552_v19 = vor.u32 16, %v551_v18 }
0x1c41   :  { %554 = vperm.xlu0 %723, %v552_v19  }
0x1cbc   :  { %v555_v20 = vpop.permute.xlu0 %554 }
0x1cbd   :  { %vm556_vm10 = vcmp.lt.s32.totalorder %v825_v10, %v555_v20 }
0x1cbe   :  { %v557_v22 = vsel %vm556_vm10, 1, %v771_v1 }
0x1cbf   :  { %v559_v23 = vshrl.u32 %v557_v22, 16  ;;  %v558_v24 = vand.u32 65535, %v557_v22 }
0x1cc1   :  { %v561_v25 = vcvt.s32.f32 %v559_v23  ;;  %v560_v26 = vcvt.s32.f32 %v558_v24 }
0x1cc3   :  { %564 = vadd.xlane.f32.xlu1 %v561_v25  ;;  %562 = vadd.xlane.f32.xlu0 %v560_v26 }
0x1d4c   :  { %v565_v27 = vpop.xlane.xlu1 %564  ;;  %v563_v28 = vpop.xlane.xlu0 %562 }
0x1d4d   :  { %v567_v29 = vcvt.f32.s32 %v565_v27  ;;  %v566_v31 = vcvt.f32.s32 %v563_v28  ;;  %v665_v27 = vand.u32 65535, %v664_v17 }
0x1d4f   :  { %v568_v30 = vshll.u32 %v567_v29, 16  ;;  %v667_v28 = vcvt.s32.f32 %v665_v27  ;;  %v658_v29 = vsel %vm657_vm4, 1, %v771_v1 }
0x1d51   :  { %v569_v32 = vadd.s32 %v568_v30, %v566_v31 }
0x1d53   :  { %vm570_vm11 = vcmp.lt.s32.totalorder %v569_v32, %v832_v21 }
0x1d54   :  { %v571_v33 = vsel %vm570_vm11, %v552_v19, %v551_v18  ;;  %v666_v18 = vshrl.u32 %v664_v17, 16  ;;  %vm680_vm11 = vcmp.eq.s32.totalorder %v812_v4, 0 }
0x1d55   :  { %v572_v34 = vor.u32 8, %v571_v33 }
0x1d56   :  { %v668_v19 = vcvt.s32.f32 %v666_v18 }
0x1d57   :  { %574 = vperm.xlu1 %724, %v572_v34  }
0x1dd2   :  { %v575_v35 = vpop.permute.xlu1 %574 }
0x1dd3   :  { %vm576_vm12 = vcmp.lt.s32.totalorder %v825_v10, %v575_v35 }
0x1dd4   :  { %v577_v36 = vsel %vm576_vm12, 1, %v771_v1 }
0x1dd5   :  { %v579_v37 = vshrl.u32 %v577_v36, 16  ;;  %v578_v38 = vand.u32 65535, %v577_v36 }
0x1dd7   :  { %v581_v39 = vcvt.s32.f32 %v579_v37  ;;  %v580_v40 = vcvt.s32.f32 %v578_v38 }
0x1dd9   :  { %584 = vadd.xlane.f32.xlu1 %v581_v39  ;;  %582 = vadd.xlane.f32.xlu0 %v580_v40 }
0x1e62   :  { %v585_v41 = vpop.xlane.xlu1 %584  ;;  %v583_v42 = vpop.xlane.xlu0 %582 }
0x1e63   :  { %v587_v43 = vcvt.f32.s32 %v585_v41  ;;  %v586_v45 = vcvt.f32.s32 %v583_v42 }
0x1e65   :  { %v588_v44 = vshll.u32 %v587_v43, 16 }
0x1e67   :  { %v589_v21 = vadd.s32 %v588_v44, %v586_v45 }
0x1e69   :  { %vm590_vm13 = vcmp.lt.s32.totalorder %v589_v21, %v919_v46 }
0x1e6a   :  { %v591_v47 = vsel %vm590_vm13, %v572_v34, %v571_v33 }
0x1e6b   :  { %v592_v48 = vor.u32 4, %v591_v47 }
0x1e6d   :  { %594 = vperm.xlu0 %723, %v592_v48  }
0x1ee8   :  { %v595_v49 = vpop.permute.xlu0 %594 }
0x1ee9   :  { %vm596_vm14 = vcmp.lt.s32.totalorder %v825_v10, %v595_v49 }
0x1eea   :  { %v597_v50 = vsel %vm596_vm14, 1, %v771_v1 }
0x1eeb   :  { %v599_v51 = vshrl.u32 %v597_v50, 16  ;;  %v598_v52 = vand.u32 65535, %v597_v50 }
0x1eed   :  { %v601_v53 = vcvt.s32.f32 %v599_v51  ;;  %v600_v54 = vcvt.s32.f32 %v598_v52 }
0x1eef   :  { %604 = vadd.xlane.f32.xlu1 %v601_v53  ;;  %602 = vadd.xlane.f32.xlu0 %v600_v54 }
0x1f78   :  { %v605_v55 = vpop.xlane.xlu1 %604  ;;  %v603_v56 = vpop.xlane.xlu0 %602 }
0x1f79   :  { %v607_v57 = vcvt.f32.s32 %v605_v55  ;;  %v606_v59 = vcvt.f32.s32 %v603_v56 }
0x1f7b   :  { %v608_v58 = vshll.u32 %v607_v57, 16 }
0x1f7d   :  { %v609_v60 = vadd.s32 %v608_v58, %v606_v59 }
0x1f7f   :  { %vm610_vm15 = vcmp.lt.s32.totalorder %v609_v60, %v919_v46 }
0x1f80   :  { %v611_v61 = vsel %vm610_vm15, %v592_v48, %v591_v47 }
0x1f81   :  { %v612_v62 = vor.u32 2, %v611_v61 }
0x1f83   :  { %614 = vperm.xlu1 %724, %v612_v62  }
0x1ffe   :  { %v615_v63 = vpop.permute.xlu1 %614 }
0x1fff   :  { %vm616_vm0 = vcmp.lt.s32.totalorder %v825_v10, %v615_v63 }
0x2000   :  { %v617_v0 = vsel %vm616_vm0, 1, %v771_v1 }
0x2001   :  { %v619_v2 = vshrl.u32 %v617_v0, 16  ;;  %v618_v3 = vand.u32 65535, %v617_v0 }
0x2003   :  { %v621_v5 = vcvt.s32.f32 %v619_v2  ;;  %v620_v6 = vcvt.s32.f32 %v618_v3 }
0x2005   :  { %624 = vadd.xlane.f32.xlu1 %v621_v5  ;;  %622 = vadd.xlane.f32.xlu0 %v620_v6 }
0x208e   :  { %v625_v7 = vpop.xlane.xlu1 %624  ;;  %v623_v8 = vpop.xlane.xlu0 %622 }
0x208f   :  { %v627_v11 = vcvt.f32.s32 %v625_v7  ;;  %v626_v13 = vcvt.f32.s32 %v623_v8 }
0x2091   :  { %v628_v12 = vshll.u32 %v627_v11, 16 }
0x2093   :  { %v629_v14 = vadd.s32 %v628_v12, %v626_v13 }
0x2095   :  { %vm630_vm1 = vcmp.lt.s32.totalorder %v629_v14, %v919_v46 }
0x2096   :  { %v631_v15 = vsel %vm630_vm1, %v612_v62, %v611_v61 }
0x2097   :  { %v632_v16 = vor.u32 1, %v631_v15 }
0x2099   :  { %634 = vperm.xlu0 %723, %v632_v16  }
0x20b8   :  { %671 = vadd.xlane.f32.xlu0 %v668_v19 }
0x2114   :  { %v635_v20 = vpop.permute.xlu0 %634 }
0x2115   :  { %vm636_vm3 = vcmp.lt.s32.totalorder %v825_v10, %v635_v20 }
0x2116   :  { %v637_v22 = vsel %vm636_vm3, 1, %v771_v1 }
0x2117   :  { %v639_v23 = vshrl.u32 %v637_v22, 16  ;;  %v638_v25 = vand.u32 65535, %v637_v22 }
0x2119   :  { %v641_v24 = vcvt.s32.f32 %v639_v23  ;;  %v640_v26 = vcvt.s32.f32 %v638_v25 }
0x211b   :  { %644 = vadd.xlane.f32.xlu1 %v641_v24 }
0x211f   :  { %642 = vadd.xlane.f32.xlu1 %v640_v26 }
0x2123   :  { %669 = vadd.xlane.f32.xlu1 %v667_v28 }
0x2134   :  { %660 = vperm.xlu1 %724, %v658_v29  }
0x2141   :  { %v672_v32 = vpop.xlane.xlu0 %671 }
0x2142   :  { %v674_v34 = vcvt.f32.s32 %v672_v32 }
0x2144   :  { %v675_v39 = vshll.u32 %v674_v34, 16 }
0x21a4   :  { %v645_v30 = vpop.xlane.xlu1 %644 }
0x21a5   :  { %v647_v31 = vcvt.f32.s32 %v645_v30 }
0x21a7   :  { %v648_v35 = vshll.u32 %v647_v31, 16 }
0x21a8   :  { %v643_v33 = vpop.xlane.xlu1 %642 }
0x21a9   :  { %v646_v36 = vcvt.f32.s32 %v643_v33 }
0x21ab   :  { %v649_v37 = vadd.s32 %v648_v35, %v646_v36 }
0x21ac   :  { %v670_v38 = vpop.xlane.xlu1 %669 }
0x21ad   :  { %vm650_vm5 = vcmp.lt.s32.totalorder %v649_v37, %v919_v46  ;;  %v673_v40 = vcvt.f32.s32 %v670_v38 }
0x21ae   :  { %v651_v41 = vsel %vm650_vm5, %v632_v16, %v631_v15 }
0x21af   :  { %v676_v42 = vadd.s32 %v675_v39, %v673_v40  ;;  %653 = vperm.xlu1 %724, %v651_v41  }
0x21b0   :  { %v661_v44 = vpop.permute.xlu1 %660 }
0x21b1   :  { %vm678_vm7 = vcmp.eq.s32.totalorder %v676_v42, 0  ;;  %vm662_vm12 = vcmp.eq.s32.totalorder %v661_v44, 1 }
0x21b2   :  { %vm679_vm8 = vmor %vm677_vm6, %vm678_vm7 }
0x21b3   :  { %v681_v43 = vsel %vm679_vm8, 1, %v771_v1  ;;  %v726_v1 = vld [vmem:[%s951_s0] sm:$0xff] }
0x21b4   :  { %683 = vperm.xlu1 %724, %v681_v43  }
0x222a   :  { %v654_v45 = vpop.permute.xlu1 %653 }
0x222b   :  { %vm655_vm9 = vcmp.le.s32.totalorder %v825_v10, %v654_v45 }
0x222c   :  { %vm656_vm10 = vmand %vm819_vm2, %vm655_vm9 }
0x222d   :  { %vm663_vm13 = vmand %vm656_vm10, %vm662_vm12 }
0x222f   :  { %v684_v21 = vpop.permute.xlu1 %683 }
0x2230   :  { %vm685_vm14 = vcmp.eq.s32.totalorder %v684_v21, 1 }
0x2231   :  { %vm686_vm15 = vmand %vm685_vm14, %vm680_vm11 }
0x2232   :  { %vm687_vm0 = vmor %vm663_vm13, %vm686_vm15 }
0x2233   :  { %v688_v10 = vsel %vm687_vm0, 3, %v726_v1  ;;  %v690_v9 = vsel %vm687_vm0, %v726_v1, 4294967196 }
0x2234   :  { %689 = vst [vmem:[#allocation2] sm:$0xff] %v688_v10  ;;  %691 = vst [vmem:[#allocation4] sm:$0xff] %v690_v9 }
0x2235   :  { %738 = shalt.err (!%p735_p4)
}
0x2236   :  { %701 = dma.vmem_to_hbm [thread:$0]  %s699_s26, 128, %s955_s4, [#allocation3]  }
0x2237   :  { %s747_s9 = scalar_lea.vmem %s709_s28, 128  ;;  %p752_p6 = scmp.lt.s32.totalorder %s709_s28, %s709_s28 }
0x2238   :  { %p748_p5 = scmp.ne.s32.totalorder %s709_s28, %s747_s9  ;;  %p753_p7 = scmp.lt.s32.totalorder %s747_s9, %s747_s9 }
0x223a   :  { %p754_p8 = por %p753_p7, %p752_p6 }
0x223c   :  { %p755_p9 = pnand %p754_p8, %p748_p5 }
0x223e   :  { %758 = shalt.err (!%p755_p9)
}
0x223f   :  { %711 = dma.vmem_to_hbm [thread:$0]  %s709_s28, 128, %s956_s5, [#allocation5]  }
0x2240   :  { %767 = dma.done.wait [#allocation3], 128  }
0x2241   :  { %768 = vsyncadd [#allocation3], 4294967168 }
0x2242   :  { %769 = dma.done.wait [#allocation5], 128  }
0x2243   :  { %770 = vsyncadd [#allocation5], 4294967168 }
0x2244   :  { %718 = vsyncpa [#allocation3], 1 }
0x2245   :  { %719 = vsyncpa [#allocation5], 1 }

</bundles_post_ra>
